<compile_context>
chip_gen: v7x
topology: tpu7x:2x2x1
jax: 0.10.0
libtpu: 0.0.40
codegen_flags: <defaults>
</compile_context>

<pallas_src>
import functools

import jax
import jax.numpy as jnp
from jax import lax
from jax.experimental import pallas as pl
from jax.experimental.pallas import tpu as pltpu

LANE = 128        # M (row) axis is padded to a multiple of 128 and kept on lanes
BN_EPS = 1e-5
LEAKY_SLOPE = 0.2


# ----------------------------------------------------------------------------
# Fused Pallas kernels: conv-as-GEMM + BatchNorm(train) + activation [+ res]
# Layout inside the kernel: channel-major (Cout, M_pad), M_pad on lanes.
# ----------------------------------------------------------------------------
def _bn_from_y(y, gamma, beta, m_true):
    """Training-mode BN over the M axis (lane axis); padded columns are zero
    conv outputs (bias=False) and are masked out of the centered variance."""
    inv_m = 1.0 / float(m_true)
    mean = jnp.sum(y, axis=1, keepdims=True) * inv_m                # (Cout, 1)
    col = lax.broadcasted_iota(jnp.int32, y.shape, 1)
    d = jnp.where(col < m_true, y - mean, 0.0)
    var = jnp.sum(d * d, axis=1, keepdims=True) * inv_m             # biased var
    invstd = lax.rsqrt(var + BN_EPS)                                # EUP
    return (y - mean) * (invstd * gamma) + beta


def _conv_bn_act_kernel(wt_ref, pt_ref, gamma_ref, beta_ref, o_ref,
                        *, m_true, act):
    # (Cout, K) bf16 @ (K, M_pad) bf16 -> (Cout, M_pad) f32 on the MXU.
    y = jnp.dot(wt_ref[...], pt_ref[...], preferred_element_type=jnp.float32)
    yn = _bn_from_y(y, gamma_ref[...], beta_ref[...], m_true)
    if act == "leaky":
        yn = jnp.where(yn >= 0.0, yn, LEAKY_SLOPE * yn)
    elif act == "relu":
        yn = jnp.maximum(yn, 0.0)
    o_ref[...] = yn


def _conv_bn_residual_kernel(wt_ref, pt_ref, res_ref, gamma_ref, beta_ref,
                             o_ref, *, m_true):
    y = jnp.dot(wt_ref[...], pt_ref[...], preferred_element_type=jnp.float32)
    yn = _bn_from_y(y, gamma_ref[...], beta_ref[...], m_true)
    o_ref[...] = yn + res_ref[...]        # ResnetBlock: x + conv_block(x)


# ----------------------------------------------------------------------------
# Pallas wrappers (single whole-array block per layer; everything fits VMEM)
# ----------------------------------------------------------------------------
def _full_spec(shape):
    zeros = (0,) * len(shape)
    return pl.BlockSpec(shape, lambda i, _z=zeros: _z)


def fused_conv_bn_act(wt, pt, gamma, beta, m_true, act):
    Cout, K = wt.shape
    M_pad = pt.shape[1]
    kern = functools.partial(_conv_bn_act_kernel, m_true=int(m_true), act=act)
    return pl.pallas_call(
        kern,
        out_shape=jax.ShapeDtypeStruct((Cout, M_pad), jnp.float32),
        grid=(1,),
        in_specs=[_full_spec((Cout, K)), _full_spec((K, M_pad)),
                  _full_spec((Cout, 1)), _full_spec((Cout, 1))],
        out_specs=_full_spec((Cout, M_pad)),
        compiler_params=pltpu.CompilerParams(
            dimension_semantics=("arbitrary",)),
    )(wt, pt, gamma, beta)


def fused_conv_bn_residual(wt, pt, res_cm, gamma, beta, m_true):
    Cout, K = wt.shape
    M_pad = pt.shape[1]
    kern = functools.partial(_conv_bn_residual_kernel, m_true=int(m_true))
    return pl.pallas_call(
        kern,
        out_shape=jax.ShapeDtypeStruct((Cout, M_pad), jnp.float32),
        grid=(1,),
        in_specs=[_full_spec((Cout, K)), _full_spec((K, M_pad)),
                  _full_spec((Cout, M_pad)),
                  _full_spec((Cout, 1)), _full_spec((Cout, 1))],
        out_specs=_full_spec((Cout, M_pad)),
        compiler_params=pltpu.CompilerParams(
            dimension_semantics=("arbitrary",)),
    )(wt, pt, res_cm, gamma, beta)


# ----------------------------------------------------------------------------
# Conv + BN (+act / +residual) layer using the fused kernel
# ----------------------------------------------------------------------------
def _im2col_t(x_nhwc, ksize, stride, pad, pad_mode):
    """im2col in bf16, returned transposed as (K, M) with K = kh*kw*Cin."""
    # TODO(synk): patch formation is still an XLA-side concat (HBM write of
    # k^2 x activation bytes); negligible at these shapes, could be moved
    # in-kernel with shifted static slices for large images.
    x_nhwc = x_nhwc.astype(jnp.bfloat16)
    if pad > 0:
        mode = "reflect" if pad_mode == "reflect" else "constant"
        x_nhwc = jnp.pad(x_nhwc, ((0, 0), (pad, pad), (pad, pad), (0, 0)),
                         mode=mode)
    N, Hp, Wp, C = x_nhwc.shape
    Ho = (Hp - ksize) // stride + 1
    Wo = (Wp - ksize) // stride + 1
    cols = []
    for i in range(ksize):
        for j in range(ksize):
            cols.append(x_nhwc[:, i:i + stride * Ho:stride,
                               j:j + stride * Wo:stride, :])
    patches = jnp.concatenate(cols, axis=-1)          # (N, Ho, Wo, k*k*C)
    patches = patches.reshape(N * Ho * Wo, ksize * ksize * C)
    return jnp.transpose(patches, (1, 0)), (N, Ho, Wo)   # (K, M)


def conv_bn_layer(x_nhwc, layer, *, ksize, stride, pad, pad_mode, act,
                  residual=None):
    """Conv2d(bias=False) -> BatchNorm2d(train) -> activation [+ residual]."""
    wt, gamma, beta = layer["wt"], layer["gamma"], layer["beta"]
    Cout = wt.shape[0]

    pt, (N, Ho, Wo) = _im2col_t(x_nhwc, ksize, stride, pad, pad_mode)  # (K, M)
    M = pt.shape[1]
    M_pad = ((M + LANE - 1) // LANE) * LANE
    pt = jnp.pad(pt, ((0, 0), (0, M_pad - M)))   # zero patch cols -> zero conv out

    if residual is None:
        out_cm = fused_conv_bn_act(wt, pt, gamma, beta, M, act)
    else:
        # residual stays in f32, channel-major, padded columns are sliced away.
        res_cm = jnp.transpose(residual.reshape(M, Cout), (1, 0))
        res_cm = jnp.pad(res_cm, ((0, 0), (0, M_pad - M)))
        out_cm = fused_conv_bn_residual(wt, pt, res_cm, gamma, beta, M)

    out = jnp.transpose(out_cm[:, :M], (1, 0)).reshape(N, Ho, Wo, Cout)
    return out


# ----------------------------------------------------------------------------
# Parameter construction (deterministic, matches PyTorch module shapes)
# ----------------------------------------------------------------------------
def _conv_layer_params(key, cin, cout, ksize):
    kw_, kg, kb = jax.random.split(key, 3)
    w = 0.02 * jax.random.normal(kw_, (cout, cin, ksize, ksize), jnp.float32)
    # (Cout, Cin, kh, kw) -> (Cout, kh*kw*Cin) to match im2col column order,
    # stored in bf16 for the MXU.
    wt = jnp.transpose(w, (0, 2, 3, 1)).reshape(cout, ksize * ksize * cin)
    wt = wt.astype(jnp.bfloat16)
    gamma = 1.0 + 0.02 * jax.random.normal(kg, (cout, 1), jnp.float32)
    beta = 0.02 * jax.random.normal(kb, (cout, 1), jnp.float32)
    return {"wt": wt, "gamma": gamma, "beta": beta}


def init_resnet_discriminator(key, input_nc, ngf=8, n_blocks=2,
                              n_downsampling=2):
    assert n_downsampling <= 2, "small demo reproduces the n_downsampling<=2 branch"
    keys = jax.random.split(key, 1 + n_downsampling + 2 * n_blocks)
    ki = iter(keys)
    params = {"stem": _conv_layer_params(next(ki), input_nc, ngf, 7),
              "down": [], "blocks": []}
    for i in range(n_downsampling):
        mult = 2 ** i
        params["down"].append(
            _conv_layer_params(next(ki), ngf * mult, ngf * mult * 2, 3))
    dim = ngf * (2 ** n_downsampling)
    for _ in range(n_blocks):
        params["blocks"].append({
            "c1": _conv_layer_params(next(ki), dim, dim, 3),
            "c2": _conv_layer_params(next(ki), dim, dim, 3),
        })
    return params


# ----------------------------------------------------------------------------
# Forward pass (mirrors ResnetDiscriminator.forward with mask=None,
# use_sigmoid=False, use_linear=False)
# ----------------------------------------------------------------------------
def resnet_discriminator_forward(params, x_nchw, use_sigmoid=False):
    x = jnp.transpose(x_nchw, (0, 2, 3, 1))   # NCHW -> NHWC (internal layout)

    # ReflectionPad2d(3) + Conv2d(k=7) + BN + LeakyReLU(0.2)
    x = conv_bn_layer(x, params["stem"], ksize=7, stride=1, pad=3,
                      pad_mode="reflect", act="leaky")

    # Downsampling: Conv2d(k=3, s=2, zero pad 1) + BN + LeakyReLU(0.2)
    for d in params["down"]:
        x = conv_bn_layer(x, d, ksize=3, stride=2, pad=1,
                          pad_mode="zero", act="leaky")

    # ResnetBlocks (padding_type='reflect', use_dropout=False):
    #   x + BN(Conv(ReLU(BN(Conv(reflect_pad(x))))))
    for blk in params["blocks"]:
        h = conv_bn_layer(x, blk["c1"], ksize=3, stride=1, pad=1,
                          pad_mode="reflect", act="relu")
        x = conv_bn_layer(h, blk["c2"], ksize=3, stride=1, pad=1,
                          pad_mode="reflect", act="none", residual=x)

    y = jnp.transpose(x, (0, 3, 1, 2))        # back to NCHW
    if use_sigmoid:
        y = jax.nn.sigmoid(y)
    # TODO(synk): optional `mask` branch (F.interpolate + multiply) and the
    # optional Linear head (linear_size) are not exercised by the defaults.
    return y


# ----------------------------------------------------------------------------
if __name__ == "__main__":
    key = jax.random.PRNGKey(0)
    k_x, k_p = jax.random.split(key)

    # Small shapes: batch=2, input_nc=4, 16x16 spatial, ngf=8, 2 resnet blocks.
    x = jax.random.normal(k_x, (2, 4, 16, 16), dtype=jnp.float32)
    params = init_resnet_discriminator(k_p, input_nc=4, ngf=8, n_blocks=2,
                                       n_downsampling=2)

    y = jax.jit(resnet_discriminator_forward)(params, x)
    y = jax.block_until_ready(y)

    assert y.shape == (2, 32, 4, 4), y.shape   # (N, ngf*4, 16/4, 16/4)
    assert bool(jnp.all(jnp.isfinite(y)))
    print("KERNEL_OK")
</pallas_src>

<mosaic_0001>
module attributes {stable_mosaic.version = 11 : i64} {
  func.func @_conv_bn_act_kernel(%arg0: i32, %arg1: memref<8x196xbf16, #tpu.memory_space<vmem>>, %arg2: memref<196x512xbf16, #tpu.memory_space<vmem>>, %arg3: memref<8x1xf32, #tpu.memory_space<vmem>>, %arg4: memref<8x1xf32, #tpu.memory_space<vmem>>, %arg5: memref<8x512xf32, #tpu.memory_space<vmem>>) attributes {dimension_semantics = [#tpu.dimension_semantics<arbitrary>], iteration_bounds = array<i64: 1>, scalar_prefetch = 0 : i64, scratch_operands = 0 : i64, tpu.core_type = #tpu.core_type<tc>, window_params = [{pipeline_mode = #tpu.pipeline_mode<synchronous>, transform_indices = @transform_0, window_bounds = array<i64: 8, 196>}, {pipeline_mode = #tpu.pipeline_mode<synchronous>, transform_indices = @transform_1, window_bounds = array<i64: 196, 512>}, {pipeline_mode = #tpu.pipeline_mode<synchronous>, transform_indices = @transform_2, window_bounds = array<i64: 8, 1>}, {pipeline_mode = #tpu.pipeline_mode<synchronous>, transform_indices = @transform_3, window_bounds = array<i64: 8, 1>}, {pipeline_mode = #tpu.pipeline_mode<synchronous>, transform_indices = @transform_4, window_bounds = array<i64: 8, 512>}]} {
    %c0 = arith.constant 0 : index
    %c0_0 = arith.constant 0 : index
    %0 = vector.load %arg1[%c0, %c0_0] : memref<8x196xbf16, #tpu.memory_space<vmem>>, vector<8x196xbf16>
    %c0_1 = arith.constant 0 : index
    %c0_2 = arith.constant 0 : index
    %1 = vector.load %arg2[%c0_1, %c0_2] : memref<196x512xbf16, #tpu.memory_space<vmem>>, vector<196x512xbf16>
    %cst = arith.constant dense<0.000000e+00> : vector<8x512xf32>
    %2 = tpu.matmul %0, %1, %cst {dimension_numbers = #tpu.dot_dimension_numbers<[1], [0], [0], [1], [0, 0, 1, 1], [], []>} : vector<8x196xbf16>, vector<196x512xbf16>, vector<8x512xf32> -> vector<8x512xf32>
    %c0_3 = arith.constant 0 : index
    %c0_4 = arith.constant 0 : index
    %3 = vector.load %arg3[%c0_3, %c0_4] : memref<8x1xf32, #tpu.memory_space<vmem>>, vector<8x1xf32>
    %c0_5 = arith.constant 0 : index
    %c0_6 = arith.constant 0 : index
    %4 = vector.load %arg4[%c0_5, %c0_6] : memref<8x1xf32, #tpu.memory_space<vmem>>, vector<8x1xf32>
    %cst_7 = arith.constant dense<0.000000e+00> : vector<8xf32>
    %5 = vector.multi_reduction <add>, %2, %cst_7 [1] : vector<8x512xf32> to vector<8xf32>
    %6 = vector.shape_cast %5 : vector<8xf32> to vector<8x1xf32>
    %cst_8 = arith.constant 0.001953125 : f32
    %7 = vector.broadcast %cst_8 : f32 to vector<8x1xf32>
    %8 = arith.mulf %6, %7 : vector<8x1xf32>
    %9 = tpu.iota {dimensions = array<i32: 1>} : vector<8x512xi32>
    %c512_i32 = arith.constant 512 : i32
    %10 = vector.broadcast %c512_i32 : i32 to vector<8x512xi32>
    %11 = arith.cmpi slt, %9, %10 : vector<8x512xi32>
    %12 = vector.broadcast %8 : vector<8x1xf32> to vector<8x512xf32>
    %13 = arith.subf %2, %12 : vector<8x512xf32>
    %cst_9 = arith.constant 0.000000e+00 : f32
    %14 = vector.broadcast %cst_9 : f32 to vector<8x512xf32>
    %15 = arith.select %11, %13, %14 : vector<8x512xi1>, vector<8x512xf32>
    %16 = arith.mulf %15, %15 : vector<8x512xf32>
    %cst_10 = arith.constant dense<0.000000e+00> : vector<8xf32>
    %17 = vector.multi_reduction <add>, %16, %cst_10 [1] : vector<8x512xf32> to vector<8xf32>
    %18 = vector.shape_cast %17 : vector<8xf32> to vector<8x1xf32>
    %cst_11 = arith.constant 0.001953125 : f32
    %19 = vector.broadcast %cst_11 : f32 to vector<8x1xf32>
    %20 = arith.mulf %18, %19 : vector<8x1xf32>
    %cst_12 = arith.constant 9.99999974E-6 : f32
    %21 = vector.broadcast %cst_12 : f32 to vector<8x1xf32>
    %22 = arith.addf %20, %21 : vector<8x1xf32>
    %23 = math.rsqrt %22 : vector<8x1xf32>
    %24 = vector.broadcast %8 : vector<8x1xf32> to vector<8x512xf32>
    %25 = arith.subf %2, %24 : vector<8x512xf32>
    %26 = arith.mulf %23, %3 : vector<8x1xf32>
    %27 = vector.broadcast %26 : vector<8x1xf32> to vector<8x512xf32>
    %28 = arith.mulf %25, %27 : vector<8x512xf32>
    %29 = vector.broadcast %4 : vector<8x1xf32> to vector<8x512xf32>
    %30 = arith.addf %28, %29 : vector<8x512xf32>
    %cst_13 = arith.constant 0.000000e+00 : f32
    %31 = vector.broadcast %cst_13 : f32 to vector<8x512xf32>
    %32 = arith.cmpf oge, %30, %31 : vector<8x512xf32>
    %cst_14 = arith.constant 2.000000e-01 : f32
    %33 = vector.broadcast %cst_14 : f32 to vector<8x512xf32>
    %34 = arith.mulf %33, %30 : vector<8x512xf32>
    %35 = arith.select %32, %30, %34 : vector<8x512xi1>, vector<8x512xf32>
    %c0_15 = arith.constant 0 : index
    %c0_16 = arith.constant 0 : index
    %36 = vector.load %arg5[%c0_15, %c0_16] : memref<8x512xf32, #tpu.memory_space<vmem>>, vector<8x512xf32>
    tpu.vector_store %arg5[%c0_15, %c0_16], %35 {strides = array<i32>} : memref<8x512xf32, #tpu.memory_space<vmem>>, vector<8x512xf32>,
    return
  }
  func.func @transform_0(%arg0: i32) -> (i32, i32) {
    %c0_i32 = arith.constant 0 : i32
    %c0_i32_0 = arith.constant 0 : i32
    %c0_i32_1 = arith.constant 0 : i32
    return %c0_i32, %c0_i32_0 : i32, i32
  }
  func.func @transform_1(%arg0: i32) -> (i32, i32) {
    %c0_i32 = arith.constant 0 : i32
    %c0_i32_0 = arith.constant 0 : i32
    %c0_i32_1 = arith.constant 0 : i32
    return %c0_i32, %c0_i32_0 : i32, i32
  }
  func.func @transform_2(%arg0: i32) -> (i32, i32) {
    %c0_i32 = arith.constant 0 : i32
    %c0_i32_0 = arith.constant 0 : i32
    %c0_i32_1 = arith.constant 0 : i32
    return %c0_i32, %c0_i32_0 : i32, i32
  }
  func.func @transform_3(%arg0: i32) -> (i32, i32) {
    %c0_i32 = arith.constant 0 : i32
    %c0_i32_0 = arith.constant 0 : i32
    %c0_i32_1 = arith.constant 0 : i32
    return %c0_i32, %c0_i32_0 : i32, i32
  }
  func.func @transform_4(%arg0: i32) -> (i32, i32) {
    %c0_i32 = arith.constant 0 : i32
    %c0_i32_0 = arith.constant 0 : i32
    %c0_i32_1 = arith.constant 0 : i32
    return %c0_i32, %c0_i32_0 : i32, i32
  }
}

module attributes {stable_mosaic.version = 11 : i64} {
  func.func @_conv_bn_act_kernel(%arg0: i32, %arg1: memref<16x72xbf16, #tpu.memory_space<vmem>>, %arg2: memref<72x128xbf16, #tpu.memory_space<vmem>>, %arg3: memref<16x1xf32, #tpu.memory_space<vmem>>, %arg4: memref<16x1xf32, #tpu.memory_space<vmem>>, %arg5: memref<16x128xf32, #tpu.memory_space<vmem>>) attributes {dimension_semantics = [#tpu.dimension_semantics<arbitrary>], iteration_bounds = array<i64: 1>, scalar_prefetch = 0 : i64, scratch_operands = 0 : i64, tpu.core_type = #tpu.core_type<tc>, window_params = [{pipeline_mode = #tpu.pipeline_mode<synchronous>, transform_indices = @transform_0, window_bounds = array<i64: 16, 72>}, {pipeline_mode = #tpu.pipeline_mode<synchronous>, transform_indices = @transform_1, window_bounds = array<i64: 72, 128>}, {pipeline_mode = #tpu.pipeline_mode<synchronous>, transform_indices = @transform_2, window_bounds = array<i64: 16, 1>}, {pipeline_mode = #tpu.pipeline_mode<synchronous>, transform_indices = @transform_3, window_bounds = array<i64: 16, 1>}, {pipeline_mode = #tpu.pipeline_mode<synchronous>, transform_indices = @transform_4, window_bounds = array<i64: 16, 128>}]} {
    %c0 = arith.constant 0 : index
    %c0_0 = arith.constant 0 : index
    %0 = vector.load %arg1[%c0, %c0_0] : memref<16x72xbf16, #tpu.memory_space<vmem>>, vector<16x72xbf16>
    %c0_1 = arith.constant 0 : index
    %c0_2 = arith.constant 0 : index
    %1 = vector.load %arg2[%c0_1, %c0_2] : memref<72x128xbf16, #tpu.memory_space<vmem>>, vector<72x128xbf16>
    %cst = arith.constant dense<0.000000e+00> : vector<16x128xf32>
    %2 = tpu.matmul %0, %1, %cst {dimension_numbers = #tpu.dot_dimension_numbers<[1], [0], [0], [1], [0, 0, 1, 1], [], []>} : vector<16x72xbf16>, vector<72x128xbf16>, vector<16x128xf32> -> vector<16x128xf32>
    %c0_3 = arith.constant 0 : index
    %c0_4 = arith.constant 0 : index
    %3 = vector.load %arg3[%c0_3, %c0_4] : memref<16x1xf32, #tpu.memory_space<vmem>>, vector<16x1xf32>
    %c0_5 = arith.constant 0 : index
    %c0_6 = arith.constant 0 : index
    %4 = vector.load %arg4[%c0_5, %c0_6] : memref<16x1xf32, #tpu.memory_space<vmem>>, vector<16x1xf32>
    %cst_7 = arith.constant dense<0.000000e+00> : vector<16xf32>
    %5 = vector.multi_reduction <add>, %2, %cst_7 [1] : vector<16x128xf32> to vector<16xf32>
    %6 = vector.shape_cast %5 : vector<16xf32> to vector<16x1xf32>
    %cst_8 = arith.constant 7.812500e-03 : f32
    %7 = vector.broadcast %cst_8 : f32 to vector<16x1xf32>
    %8 = arith.mulf %6, %7 : vector<16x1xf32>
    %9 = tpu.iota {dimensions = array<i32: 1>} : vector<16x128xi32>
    %c128_i32 = arith.constant 128 : i32
    %10 = vector.broadcast %c128_i32 : i32 to vector<16x128xi32>
    %11 = arith.cmpi slt, %9, %10 : vector<16x128xi32>
    %12 = vector.broadcast %8 : vector<16x1xf32> to vector<16x128xf32>
    %13 = arith.subf %2, %12 : vector<16x128xf32>
    %cst_9 = arith.constant 0.000000e+00 : f32
    %14 = vector.broadcast %cst_9 : f32 to vector<16x128xf32>
    %15 = arith.select %11, %13, %14 : vector<16x128xi1>, vector<16x128xf32>
    %16 = arith.mulf %15, %15 : vector<16x128xf32>
    %cst_10 = arith.constant dense<0.000000e+00> : vector<16xf32>
    %17 = vector.multi_reduction <add>, %16, %cst_10 [1] : vector<16x128xf32> to vector<16xf32>
    %18 = vector.shape_cast %17 : vector<16xf32> to vector<16x1xf32>
    %cst_11 = arith.constant 7.812500e-03 : f32
    %19 = vector.broadcast %cst_11 : f32 to vector<16x1xf32>
    %20 = arith.mulf %18, %19 : vector<16x1xf32>
    %cst_12 = arith.constant 9.99999974E-6 : f32
    %21 = vector.broadcast %cst_12 : f32 to vector<16x1xf32>
    %22 = arith.addf %20, %21 : vector<16x1xf32>
    %23 = math.rsqrt %22 : vector<16x1xf32>
    %24 = vector.broadcast %8 : vector<16x1xf32> to vector<16x128xf32>
    %25 = arith.subf %2, %24 : vector<16x128xf32>
    %26 = arith.mulf %23, %3 : vector<16x1xf32>
    %27 = vector.broadcast %26 : vector<16x1xf32> to vector<16x128xf32>
    %28 = arith.mulf %25, %27 : vector<16x128xf32>
    %29 = vector.broadcast %4 : vector<16x1xf32> to vector<16x128xf32>
    %30 = arith.addf %28, %29 : vector<16x128xf32>
    %cst_13 = arith.constant 0.000000e+00 : f32
    %31 = vector.broadcast %cst_13 : f32 to vector<16x128xf32>
    %32 = arith.cmpf oge, %30, %31 : vector<16x128xf32>
    %cst_14 = arith.constant 2.000000e-01 : f32
    %33 = vector.broadcast %cst_14 : f32 to vector<16x128xf32>
    %34 = arith.mulf %33, %30 : vector<16x128xf32>
    %35 = arith.select %32, %30, %34 : vector<16x128xi1>, vector<16x128xf32>
    %c0_15 = arith.constant 0 : index
    %c0_16 = arith.constant 0 : index
    %36 = vector.load %arg5[%c0_15, %c0_16] : memref<16x128xf32, #tpu.memory_space<vmem>>, vector<16x128xf32>
    tpu.vector_store %arg5[%c0_15, %c0_16], %35 {strides = array<i32>} : memref<16x128xf32, #tpu.memory_space<vmem>>, vector<16x128xf32>,
    return
  }
  func.func @transform_0(%arg0: i32) -> (i32, i32) {
    %c0_i32 = arith.constant 0 : i32
    %c0_i32_0 = arith.constant 0 : i32
    %c0_i32_1 = arith.constant 0 : i32
    return %c0_i32, %c0_i32_0 : i32, i32
  }
  func.func @transform_1(%arg0: i32) -> (i32, i32) {
    %c0_i32 = arith.constant 0 : i32
    %c0_i32_0 = arith.constant 0 : i32
    %c0_i32_1 = arith.constant 0 : i32
    return %c0_i32, %c0_i32_0 : i32, i32
  }
  func.func @transform_2(%arg0: i32) -> (i32, i32) {
    %c0_i32 = arith.constant 0 : i32
    %c0_i32_0 = arith.constant 0 : i32
    %c0_i32_1 = arith.constant 0 : i32
    return %c0_i32, %c0_i32_0 : i32, i32
  }
  func.func @transform_3(%arg0: i32) -> (i32, i32) {
    %c0_i32 = arith.constant 0 : i32
    %c0_i32_0 = arith.constant 0 : i32
    %c0_i32_1 = arith.constant 0 : i32
    return %c0_i32, %c0_i32_0 : i32, i32
  }
  func.func @transform_4(%arg0: i32) -> (i32, i32) {
    %c0_i32 = arith.constant 0 : i32
    %c0_i32_0 = arith.constant 0 : i32
    %c0_i32_1 = arith.constant 0 : i32
    return %c0_i32, %c0_i32_0 : i32, i32
  }
}

module attributes {stable_mosaic.version = 11 : i64} {
  func.func @_conv_bn_act_kernel(%arg0: i32, %arg1: memref<32x144xbf16, #tpu.memory_space<vmem>>, %arg2: memref<144x128xbf16, #tpu.memory_space<vmem>>, %arg3: memref<32x1xf32, #tpu.memory_space<vmem>>, %arg4: memref<32x1xf32, #tpu.memory_space<vmem>>, %arg5: memref<32x128xf32, #tpu.memory_space<vmem>>) attributes {dimension_semantics = [#tpu.dimension_semantics<arbitrary>], iteration_bounds = array<i64: 1>, scalar_prefetch = 0 : i64, scratch_operands = 0 : i64, tpu.core_type = #tpu.core_type<tc>, window_params = [{pipeline_mode = #tpu.pipeline_mode<synchronous>, transform_indices = @transform_0, window_bounds = array<i64: 32, 144>}, {pipeline_mode = #tpu.pipeline_mode<synchronous>, transform_indices = @transform_1, window_bounds = array<i64: 144, 128>}, {pipeline_mode = #tpu.pipeline_mode<synchronous>, transform_indices = @transform_2, window_bounds = array<i64: 32, 1>}, {pipeline_mode = #tpu.pipeline_mode<synchronous>, transform_indices = @transform_3, window_bounds = array<i64: 32, 1>}, {pipeline_mode = #tpu.pipeline_mode<synchronous>, transform_indices = @transform_4, window_bounds = array<i64: 32, 128>}]} {
    %c0 = arith.constant 0 : index
    %c0_0 = arith.constant 0 : index
    %0 = vector.load %arg1[%c0, %c0_0] : memref<32x144xbf16, #tpu.memory_space<vmem>>, vector<32x144xbf16>
    %c0_1 = arith.constant 0 : index
    %c0_2 = arith.constant 0 : index
    %1 = vector.load %arg2[%c0_1, %c0_2] : memref<144x128xbf16, #tpu.memory_space<vmem>>, vector<144x128xbf16>
    %cst = arith.constant dense<0.000000e+00> : vector<32x128xf32>
    %2 = tpu.matmul %0, %1, %cst {dimension_numbers = #tpu.dot_dimension_numbers<[1], [0], [0], [1], [0, 0, 1, 1], [], []>} : vector<32x144xbf16>, vector<144x128xbf16>, vector<32x128xf32> -> vector<32x128xf32>
    %c0_3 = arith.constant 0 : index
    %c0_4 = arith.constant 0 : index
    %3 = vector.load %arg3[%c0_3, %c0_4] : memref<32x1xf32, #tpu.memory_space<vmem>>, vector<32x1xf32>
    %c0_5 = arith.constant 0 : index
    %c0_6 = arith.constant 0 : index
    %4 = vector.load %arg4[%c0_5, %c0_6] : memref<32x1xf32, #tpu.memory_space<vmem>>, vector<32x1xf32>
    %cst_7 = arith.constant dense<0.000000e+00> : vector<32xf32>
    %5 = vector.multi_reduction <add>, %2, %cst_7 [1] : vector<32x128xf32> to vector<32xf32>
    %6 = vector.shape_cast %5 : vector<32xf32> to vector<32x1xf32>
    %cst_8 = arith.constant 3.125000e-02 : f32
    %7 = vector.broadcast %cst_8 : f32 to vector<32x1xf32>
    %8 = arith.mulf %6, %7 : vector<32x1xf32>
    %9 = tpu.iota {dimensions = array<i32: 1>} : vector<32x128xi32>
    %c32_i32 = arith.constant 32 : i32
    %10 = vector.broadcast %c32_i32 : i32 to vector<32x128xi32>
    %11 = arith.cmpi slt, %9, %10 : vector<32x128xi32>
    %12 = vector.broadcast %8 : vector<32x1xf32> to vector<32x128xf32>
    %13 = arith.subf %2, %12 : vector<32x128xf32>
    %cst_9 = arith.constant 0.000000e+00 : f32
    %14 = vector.broadcast %cst_9 : f32 to vector<32x128xf32>
    %15 = arith.select %11, %13, %14 : vector<32x128xi1>, vector<32x128xf32>
    %16 = arith.mulf %15, %15 : vector<32x128xf32>
    %cst_10 = arith.constant dense<0.000000e+00> : vector<32xf32>
    %17 = vector.multi_reduction <add>, %16, %cst_10 [1] : vector<32x128xf32> to vector<32xf32>
    %18 = vector.shape_cast %17 : vector<32xf32> to vector<32x1xf32>
    %cst_11 = arith.constant 3.125000e-02 : f32
    %19 = vector.broadcast %cst_11 : f32 to vector<32x1xf32>
    %20 = arith.mulf %18, %19 : vector<32x1xf32>
    %cst_12 = arith.constant 9.99999974E-6 : f32
    %21 = vector.broadcast %cst_12 : f32 to vector<32x1xf32>
    %22 = arith.addf %20, %21 : vector<32x1xf32>
    %23 = math.rsqrt %22 : vector<32x1xf32>
    %24 = vector.broadcast %8 : vector<32x1xf32> to vector<32x128xf32>
    %25 = arith.subf %2, %24 : vector<32x128xf32>
    %26 = arith.mulf %23, %3 : vector<32x1xf32>
    %27 = vector.broadcast %26 : vector<32x1xf32> to vector<32x128xf32>
    %28 = arith.mulf %25, %27 : vector<32x128xf32>
    %29 = vector.broadcast %4 : vector<32x1xf32> to vector<32x128xf32>
    %30 = arith.addf %28, %29 : vector<32x128xf32>
    %cst_13 = arith.constant 0.000000e+00 : f32
    %31 = vector.broadcast %cst_13 : f32 to vector<32x128xf32>
    %32 = arith.cmpf oge, %30, %31 : vector<32x128xf32>
    %cst_14 = arith.constant 2.000000e-01 : f32
    %33 = vector.broadcast %cst_14 : f32 to vector<32x128xf32>
    %34 = arith.mulf %33, %30 : vector<32x128xf32>
    %35 = arith.select %32, %30, %34 : vector<32x128xi1>, vector<32x128xf32>
    %c0_15 = arith.constant 0 : index
    %c0_16 = arith.constant 0 : index
    %36 = vector.load %arg5[%c0_15, %c0_16] : memref<32x128xf32, #tpu.memory_space<vmem>>, vector<32x128xf32>
    tpu.vector_store %arg5[%c0_15, %c0_16], %35 {strides = array<i32>} : memref<32x128xf32, #tpu.memory_space<vmem>>, vector<32x128xf32>,
    return
  }
  func.func @transform_0(%arg0: i32) -> (i32, i32) {
    %c0_i32 = arith.constant 0 : i32
    %c0_i32_0 = arith.constant 0 : i32
    %c0_i32_1 = arith.constant 0 : i32
    return %c0_i32, %c0_i32_0 : i32, i32
  }
  func.func @transform_1(%arg0: i32) -> (i32, i32) {
    %c0_i32 = arith.constant 0 : i32
    %c0_i32_0 = arith.constant 0 : i32
    %c0_i32_1 = arith.constant 0 : i32
    return %c0_i32, %c0_i32_0 : i32, i32
  }
  func.func @transform_2(%arg0: i32) -> (i32, i32) {
    %c0_i32 = arith.constant 0 : i32
    %c0_i32_0 = arith.constant 0 : i32
    %c0_i32_1 = arith.constant 0 : i32
    return %c0_i32, %c0_i32_0 : i32, i32
  }
  func.func @transform_3(%arg0: i32) -> (i32, i32) {
    %c0_i32 = arith.constant 0 : i32
    %c0_i32_0 = arith.constant 0 : i32
    %c0_i32_1 = arith.constant 0 : i32
    return %c0_i32, %c0_i32_0 : i32, i32
  }
  func.func @transform_4(%arg0: i32) -> (i32, i32) {
    %c0_i32 = arith.constant 0 : i32
    %c0_i32_0 = arith.constant 0 : i32
    %c0_i32_1 = arith.constant 0 : i32
    return %c0_i32, %c0_i32_0 : i32, i32
  }
}

module attributes {stable_mosaic.version = 11 : i64} {
  func.func @_conv_bn_act_kernel(%arg0: i32, %arg1: memref<32x288xbf16, #tpu.memory_space<vmem>>, %arg2: memref<288x128xbf16, #tpu.memory_space<vmem>>, %arg3: memref<32x1xf32, #tpu.memory_space<vmem>>, %arg4: memref<32x1xf32, #tpu.memory_space<vmem>>, %arg5: memref<32x128xf32, #tpu.memory_space<vmem>>) attributes {dimension_semantics = [#tpu.dimension_semantics<arbitrary>], iteration_bounds = array<i64: 1>, scalar_prefetch = 0 : i64, scratch_operands = 0 : i64, tpu.core_type = #tpu.core_type<tc>, window_params = [{pipeline_mode = #tpu.pipeline_mode<synchronous>, transform_indices = @transform_0, window_bounds = array<i64: 32, 288>}, {pipeline_mode = #tpu.pipeline_mode<synchronous>, transform_indices = @transform_1, window_bounds = array<i64: 288, 128>}, {pipeline_mode = #tpu.pipeline_mode<synchronous>, transform_indices = @transform_2, window_bounds = array<i64: 32, 1>}, {pipeline_mode = #tpu.pipeline_mode<synchronous>, transform_indices = @transform_3, window_bounds = array<i64: 32, 1>}, {pipeline_mode = #tpu.pipeline_mode<synchronous>, transform_indices = @transform_4, window_bounds = array<i64: 32, 128>}]} {
    %c0 = arith.constant 0 : index
    %c0_0 = arith.constant 0 : index
    %0 = vector.load %arg1[%c0, %c0_0] : memref<32x288xbf16, #tpu.memory_space<vmem>>, vector<32x288xbf16>
    %c0_1 = arith.constant 0 : index
    %c0_2 = arith.constant 0 : index
    %1 = vector.load %arg2[%c0_1, %c0_2] : memref<288x128xbf16, #tpu.memory_space<vmem>>, vector<288x128xbf16>
    %cst = arith.constant dense<0.000000e+00> : vector<32x128xf32>
    %2 = tpu.matmul %0, %1, %cst {dimension_numbers = #tpu.dot_dimension_numbers<[1], [0], [0], [1], [0, 0, 1, 1], [], []>} : vector<32x288xbf16>, vector<288x128xbf16>, vector<32x128xf32> -> vector<32x128xf32>
    %c0_3 = arith.constant 0 : index
    %c0_4 = arith.constant 0 : index
    %3 = vector.load %arg3[%c0_3, %c0_4] : memref<32x1xf32, #tpu.memory_space<vmem>>, vector<32x1xf32>
    %c0_5 = arith.constant 0 : index
    %c0_6 = arith.constant 0 : index
    %4 = vector.load %arg4[%c0_5, %c0_6] : memref<32x1xf32, #tpu.memory_space<vmem>>, vector<32x1xf32>
    %cst_7 = arith.constant dense<0.000000e+00> : vector<32xf32>
    %5 = vector.multi_reduction <add>, %2, %cst_7 [1] : vector<32x128xf32> to vector<32xf32>
    %6 = vector.shape_cast %5 : vector<32xf32> to vector<32x1xf32>
    %cst_8 = arith.constant 3.125000e-02 : f32
    %7 = vector.broadcast %cst_8 : f32 to vector<32x1xf32>
    %8 = arith.mulf %6, %7 : vector<32x1xf32>
    %9 = tpu.iota {dimensions = array<i32: 1>} : vector<32x128xi32>
    %c32_i32 = arith.constant 32 : i32
    %10 = vector.broadcast %c32_i32 : i32 to vector<32x128xi32>
    %11 = arith.cmpi slt, %9, %10 : vector<32x128xi32>
    %12 = vector.broadcast %8 : vector<32x1xf32> to vector<32x128xf32>
    %13 = arith.subf %2, %12 : vector<32x128xf32>
    %cst_9 = arith.constant 0.000000e+00 : f32
    %14 = vector.broadcast %cst_9 : f32 to vector<32x128xf32>
    %15 = arith.select %11, %13, %14 : vector<32x128xi1>, vector<32x128xf32>
    %16 = arith.mulf %15, %15 : vector<32x128xf32>
    %cst_10 = arith.constant dense<0.000000e+00> : vector<32xf32>
    %17 = vector.multi_reduction <add>, %16, %cst_10 [1] : vector<32x128xf32> to vector<32xf32>
    %18 = vector.shape_cast %17 : vector<32xf32> to vector<32x1xf32>
    %cst_11 = arith.constant 3.125000e-02 : f32
    %19 = vector.broadcast %cst_11 : f32 to vector<32x1xf32>
    %20 = arith.mulf %18, %19 : vector<32x1xf32>
    %cst_12 = arith.constant 9.99999974E-6 : f32
    %21 = vector.broadcast %cst_12 : f32 to vector<32x1xf32>
    %22 = arith.addf %20, %21 : vector<32x1xf32>
    %23 = math.rsqrt %22 : vector<32x1xf32>
    %24 = vector.broadcast %8 : vector<32x1xf32> to vector<32x128xf32>
    %25 = arith.subf %2, %24 : vector<32x128xf32>
    %26 = arith.mulf %23, %3 : vector<32x1xf32>
    %27 = vector.broadcast %26 : vector<32x1xf32> to vector<32x128xf32>
    %28 = arith.mulf %25, %27 : vector<32x128xf32>
    %29 = vector.broadcast %4 : vector<32x1xf32> to vector<32x128xf32>
    %30 = arith.addf %28, %29 : vector<32x128xf32>
    %cst_13 = arith.constant 0.000000e+00 : f32
    %31 = vector.broadcast %cst_13 : f32 to vector<32x128xf32>
    %32 = arith.maximumf %30, %31 : vector<32x128xf32>
    %c0_14 = arith.constant 0 : index
    %c0_15 = arith.constant 0 : index
    %33 = vector.load %arg5[%c0_14, %c0_15] : memref<32x128xf32, #tpu.memory_space<vmem>>, vector<32x128xf32>
    tpu.vector_store %arg5[%c0_14, %c0_15], %32 {strides = array<i32>} : memref<32x128xf32, #tpu.memory_space<vmem>>, vector<32x128xf32>,
    return
  }
  func.func @transform_0(%arg0: i32) -> (i32, i32) {
    %c0_i32 = arith.constant 0 : i32
    %c0_i32_0 = arith.constant 0 : i32
    %c0_i32_1 = arith.constant 0 : i32
    return %c0_i32, %c0_i32_0 : i32, i32
  }
  func.func @transform_1(%arg0: i32) -> (i32, i32) {
    %c0_i32 = arith.constant 0 : i32
    %c0_i32_0 = arith.constant 0 : i32
    %c0_i32_1 = arith.constant 0 : i32
    return %c0_i32, %c0_i32_0 : i32, i32
  }
  func.func @transform_2(%arg0: i32) -> (i32, i32) {
    %c0_i32 = arith.constant 0 : i32
    %c0_i32_0 = arith.constant 0 : i32
    %c0_i32_1 = arith.constant 0 : i32
    return %c0_i32, %c0_i32_0 : i32, i32
  }
  func.func @transform_3(%arg0: i32) -> (i32, i32) {
    %c0_i32 = arith.constant 0 : i32
    %c0_i32_0 = arith.constant 0 : i32
    %c0_i32_1 = arith.constant 0 : i32
    return %c0_i32, %c0_i32_0 : i32, i32
  }
  func.func @transform_4(%arg0: i32) -> (i32, i32) {
    %c0_i32 = arith.constant 0 : i32
    %c0_i32_0 = arith.constant 0 : i32
    %c0_i32_1 = arith.constant 0 : i32
    return %c0_i32, %c0_i32_0 : i32, i32
  }
}

module attributes {stable_mosaic.version = 11 : i64} {
  func.func @_conv_bn_residual_kernel(%arg0: i32, %arg1: memref<32x288xbf16, #tpu.memory_space<vmem>>, %arg2: memref<288x128xbf16, #tpu.memory_space<vmem>>, %arg3: memref<32x128xf32, #tpu.memory_space<vmem>>, %arg4: memref<32x1xf32, #tpu.memory_space<vmem>>, %arg5: memref<32x1xf32, #tpu.memory_space<vmem>>, %arg6: memref<32x128xf32, #tpu.memory_space<vmem>>) attributes {dimension_semantics = [#tpu.dimension_semantics<arbitrary>], iteration_bounds = array<i64: 1>, scalar_prefetch = 0 : i64, scratch_operands = 0 : i64, tpu.core_type = #tpu.core_type<tc>, window_params = [{pipeline_mode = #tpu.pipeline_mode<synchronous>, transform_indices = @transform_0, window_bounds = array<i64: 32, 288>}, {pipeline_mode = #tpu.pipeline_mode<synchronous>, transform_indices = @transform_1, window_bounds = array<i64: 288, 128>}, {pipeline_mode = #tpu.pipeline_mode<synchronous>, transform_indices = @transform_2, window_bounds = array<i64: 32, 128>}, {pipeline_mode = #tpu.pipeline_mode<synchronous>, transform_indices = @transform_3, window_bounds = array<i64: 32, 1>}, {pipeline_mode = #tpu.pipeline_mode<synchronous>, transform_indices = @transform_4, window_bounds = array<i64: 32, 1>}, {pipeline_mode = #tpu.pipeline_mode<synchronous>, transform_indices = @transform_5, window_bounds = array<i64: 32, 128>}]} {
    %c0 = arith.constant 0 : index
    %c0_0 = arith.constant 0 : index
    %0 = vector.load %arg1[%c0, %c0_0] : memref<32x288xbf16, #tpu.memory_space<vmem>>, vector<32x288xbf16>
    %c0_1 = arith.constant 0 : index
    %c0_2 = arith.constant 0 : index
    %1 = vector.load %arg2[%c0_1, %c0_2] : memref<288x128xbf16, #tpu.memory_space<vmem>>, vector<288x128xbf16>
    %cst = arith.constant dense<0.000000e+00> : vector<32x128xf32>
    %2 = tpu.matmul %0, %1, %cst {dimension_numbers = #tpu.dot_dimension_numbers<[1], [0], [0], [1], [0, 0, 1, 1], [], []>} : vector<32x288xbf16>, vector<288x128xbf16>, vector<32x128xf32> -> vector<32x128xf32>
    %c0_3 = arith.constant 0 : index
    %c0_4 = arith.constant 0 : index
    %3 = vector.load %arg4[%c0_3, %c0_4] : memref<32x1xf32, #tpu.memory_space<vmem>>, vector<32x1xf32>
    %c0_5 = arith.constant 0 : index
    %c0_6 = arith.constant 0 : index
    %4 = vector.load %arg5[%c0_5, %c0_6] : memref<32x1xf32, #tpu.memory_space<vmem>>, vector<32x1xf32>
    %cst_7 = arith.constant dense<0.000000e+00> : vector<32xf32>
    %5 = vector.multi_reduction <add>, %2, %cst_7 [1] : vector<32x128xf32> to vector<32xf32>
    %6 = vector.shape_cast %5 : vector<32xf32> to vector<32x1xf32>
    %cst_8 = arith.constant 3.125000e-02 : f32
    %7 = vector.broadcast %cst_8 : f32 to vector<32x1xf32>
    %8 = arith.mulf %6, %7 : vector<32x1xf32>
    %9 = tpu.iota {dimensions = array<i32: 1>} : vector<32x128xi32>
    %c32_i32 = arith.constant 32 : i32
    %10 = vector.broadcast %c32_i32 : i32 to vector<32x128xi32>
    %11 = arith.cmpi slt, %9, %10 : vector<32x128xi32>
    %12 = vector.broadcast %8 : vector<32x1xf32> to vector<32x128xf32>
    %13 = arith.subf %2, %12 : vector<32x128xf32>
    %cst_9 = arith.constant 0.000000e+00 : f32
    %14 = vector.broadcast %cst_9 : f32 to vector<32x128xf32>
    %15 = arith.select %11, %13, %14 : vector<32x128xi1>, vector<32x128xf32>
    %16 = arith.mulf %15, %15 : vector<32x128xf32>
    %cst_10 = arith.constant dense<0.000000e+00> : vector<32xf32>
    %17 = vector.multi_reduction <add>, %16, %cst_10 [1] : vector<32x128xf32> to vector<32xf32>
    %18 = vector.shape_cast %17 : vector<32xf32> to vector<32x1xf32>
    %cst_11 = arith.constant 3.125000e-02 : f32
    %19 = vector.broadcast %cst_11 : f32 to vector<32x1xf32>
    %20 = arith.mulf %18, %19 : vector<32x1xf32>
    %cst_12 = arith.constant 9.99999974E-6 : f32
    %21 = vector.broadcast %cst_12 : f32 to vector<32x1xf32>
    %22 = arith.addf %20, %21 : vector<32x1xf32>
    %23 = math.rsqrt %22 : vector<32x1xf32>
    %24 = vector.broadcast %8 : vector<32x1xf32> to vector<32x128xf32>
    %25 = arith.subf %2, %24 : vector<32x128xf32>
    %26 = arith.mulf %23, %3 : vector<32x1xf32>
    %27 = vector.broadcast %26 : vector<32x1xf32> to vector<32x128xf32>
    %28 = arith.mulf %25, %27 : vector<32x128xf32>
    %29 = vector.broadcast %4 : vector<32x1xf32> to vector<32x128xf32>
    %30 = arith.addf %28, %29 : vector<32x128xf32>
    %c0_13 = arith.constant 0 : index
    %c0_14 = arith.constant 0 : index
    %31 = vector.load %arg3[%c0_13, %c0_14] : memref<32x128xf32, #tpu.memory_space<vmem>>, vector<32x128xf32>
    %32 = arith.addf %30, %31 : vector<32x128xf32>
    %c0_15 = arith.constant 0 : index
    %c0_16 = arith.constant 0 : index
    %33 = vector.load %arg6[%c0_15, %c0_16] : memref<32x128xf32, #tpu.memory_space<vmem>>, vector<32x128xf32>
    tpu.vector_store %arg6[%c0_15, %c0_16], %32 {strides = array<i32>} : memref<32x128xf32, #tpu.memory_space<vmem>>, vector<32x128xf32>,
    return
  }
  func.func @transform_0(%arg0: i32) -> (i32, i32) {
    %c0_i32 = arith.constant 0 : i32
    %c0_i32_0 = arith.constant 0 : i32
    %c0_i32_1 = arith.constant 0 : i32
    return %c0_i32, %c0_i32_0 : i32, i32
  }
  func.func @transform_1(%arg0: i32) -> (i32, i32) {
    %c0_i32 = arith.constant 0 : i32
    %c0_i32_0 = arith.constant 0 : i32
    %c0_i32_1 = arith.constant 0 : i32
    return %c0_i32, %c0_i32_0 : i32, i32
  }
  func.func @transform_2(%arg0: i32) -> (i32, i32) {
    %c0_i32 = arith.constant 0 : i32
    %c0_i32_0 = arith.constant 0 : i32
    %c0_i32_1 = arith.constant 0 : i32
    return %c0_i32, %c0_i32_0 : i32, i32
  }
  func.func @transform_3(%arg0: i32) -> (i32, i32) {
    %c0_i32 = arith.constant 0 : i32
    %c0_i32_0 = arith.constant 0 : i32
    %c0_i32_1 = arith.constant 0 : i32
    return %c0_i32, %c0_i32_0 : i32, i32
  }
  func.func @transform_4(%arg0: i32) -> (i32, i32) {
    %c0_i32 = arith.constant 0 : i32
    %c0_i32_0 = arith.constant 0 : i32
    %c0_i32_1 = arith.constant 0 : i32
    return %c0_i32, %c0_i32_0 : i32, i32
  }
  func.func @transform_5(%arg0: i32) -> (i32, i32) {
    %c0_i32 = arith.constant 0 : i32
    %c0_i32_0 = arith.constant 0 : i32
    %c0_i32_1 = arith.constant 0 : i32
    return %c0_i32, %c0_i32_0 : i32, i32
  }
}

</mosaic_0001>

<bundles_post_ra>
// kernel: resnet_discriminator_forward.7
= control target key start
LH: loop header
LB: loop body
LE: loop exit
PB: predicated region body
PF: predicated region fallthrough
CT: control target
= control target key end

     0   :  { %vm325_vm0 = vcmask 556032   ;;  %vm329_vm1 = vcmask 1041408   ;;  %s838_s1 = inlined_call_operand.vmem [shape: bf16[196,512], index: 1, kind: input, shape index: {}]   ;;  %s839_s0 = inlined_call_operand.vmem [shape: bf16[8,196], index: 0, kind: input, shape index: {}]   ;;  %s840_s2 = inlined_call_operand.vmem [shape: f32[8,1], index: 2, kind: input, shape index: {}]   ;;  %s841_s3 = inlined_call_operand.vmem [shape: f32[8,1], index: 3, kind: input, shape index: {}]   ;;  %s842_s4 = inlined_call_operand.vmem [shape: f32[8,512], index: 4, kind: output, shape index: {}]  }
   0x1   :  { %v561_v0 = vld [vmem:[%s838_s1 + $0x4] ss:$16 sps:$4 sm:$0xff]   ;;  %v563_v1 = vld [vmem:[%s838_s1 + $0xc] ss:$16 sps:$4 sm:$0xff]   ;;  %v565_v2 = vld [vmem:[%s838_s1] ss:$16 sps:$4 sm:$0xff]  }
   0x2   :  { %342 = vmatprep.subr.bf16.mxu0 %v561_v0  ;;  %v566_v3 = vld [vmem:[%s838_s1 + $0x8] ss:$16 sps:$4 sm:$0xff]   ;;  %383 = vmatprep.subr.bf16.mxu1 %v563_v1  ;;  %v567_v4 = vld [vmem:[%s838_s1 + $0x24] ss:$16 sps:$4 sm:$0xff]   ;;  %v569_v5 = vld [vmem:[%s838_s1 + $0x2c] ss:$16 sps:$4 sm:$0xff]  }
   0x3   :  { %343 = vmatpush1.bf16.msra.mxu0 %v565_v2  ;;  %384 = vmatpush1.bf16.msra.mxu1 %v566_v3  ;;  %v571_v6 = vld [vmem:[%s838_s1 + $0x20] ss:$16 sps:$4 sm:$0xff]   ;;  %v572_v7 = vld [vmem:[%s838_s1 + $0x28] ss:$16 sps:$4 sm:$0xff]   ;;  %v573_v8 = vld [vmem:[%s838_s1 + $0x44] ss:$16 sps:$4 sm:$0xff]  }
   0x4   :  { %344 = vmatprep.subr.bf16.mxu0 %v567_v4  ;;  %385 = vmatprep.subr.bf16.mxu1 %v569_v5  ;;  %v575_v9 = vld [vmem:[%s838_s1 + $0x4c] ss:$16 sps:$4 sm:$0xff]   ;;  %v577_v10 = vld [vmem:[%s838_s1 + $0x40] ss:$16 sps:$4 sm:$0xff]   ;;  %v578_v11 = vld [vmem:[%s838_s1 + $0x48] ss:$16 sps:$4 sm:$0xff]  }
   0x5   :  { %v579_v12 = vld [vmem:[%s838_s1 + $0x64] ss:$16 sps:$4 sm:$0xff]   ;;  %v581_v13 = vld [vmem:[%s838_s1 + $0x6c] ss:$16 sps:$4 sm:$0xff]   ;;  %v583_v14 = vld [vmem:[%s838_s1 + $0x60] ss:$16 sps:$4 sm:$0xff]  }
   0x6   :  { %v584_v15 = vld [vmem:[%s838_s1 + $0x68] ss:$16 sps:$4 sm:$0xff]   ;;  %v585_v16 = vld [vmem:[%s838_s1 + $0x84] ss:$16 sps:$4 sm:$0xff]   ;;  %v587_v17 = vld [vmem:[%s838_s1 + $0x8c] ss:$16 sps:$4 sm:$0xff]  }
   0x7   :  { %345 = vmatpush1.bf16.msra.mxu0 %v571_v6  ;;  %386 = vmatpush1.bf16.msra.mxu1 %v572_v7  ;;  %v589_v18 = vld [vmem:[%s838_s1 + $0x80] ss:$16 sps:$4 sm:$0xff]   ;;  %v590_v19 = vld [vmem:[%s838_s1 + $0x88] ss:$16 sps:$4 sm:$0xff]   ;;  %v591_v20 = vld [vmem:[%s838_s1 + $0xa4] ss:$16 sps:$4 sm:$0xff]  }
   0x8   :  { %346 = vmatprep.subr.bf16.mxu0 %v573_v8  ;;  %387 = vmatprep.subr.bf16.mxu1 %v575_v9  ;;  %v593_v21 = vld [vmem:[%s838_s1 + $0xac] ss:$16 sps:$4 sm:$0xff]   ;;  %v595_v22 = vld [vmem:[%s838_s1 + $0xa0] ss:$16 sps:$4 sm:$0xff]   ;;  %v596_v23 = vld [vmem:[%s838_s1 + $0xa8] ss:$16 sps:$4 sm:$0xff]  }
   0x9   :  { %v597_v24 = vld [vmem:[%s838_s1 + $0xc4] ss:$16 sps:$4 sm:$0xff]   ;;  %v599_v25 = vld [vmem:[%s838_s1 + $0xcc] ss:$16 sps:$4 sm:$0xff]   ;;  %v601_v26 = vld [vmem:[%s838_s1 + $0xc0] ss:$16 sps:$4 sm:$0xff]  }
   0xa   :  { %v602_v27 = vld [vmem:[%s838_s1 + $0xc8] ss:$16 sps:$4 sm:$0xff]   ;;  %v603_v28 = vld [vmem:[%s838_s1 + $0xe4] ss:$16 sps:$4 sm:$0xff]   ;;  %v605_v29 = vld [vmem:[%s838_s1 + $0xec] ss:$16 sps:$4 sm:$0xff]  }
   0xb   :  { %347 = vmatpush1.bf16.msra.mxu0 %v577_v10  ;;  %388 = vmatpush1.bf16.msra.mxu1 %v578_v11  ;;  %v607_v30 = vld [vmem:[%s838_s1 + $0xe0] ss:$16 sps:$4 sm:$0xff]   ;;  %v608_v31 = vld [vmem:[%s838_s1 + $0xe8] ss:$16 sps:$4 sm:$0xff]   ;;  %v609_v32 = vld [vmem:[%s838_s1 + $0x104] ss:$16 sps:$4 sm:$0xff]  }
   0xc   :  { %348 = vmatprep.subr.bf16.mxu0 %v579_v12  ;;  %389 = vmatprep.subr.bf16.mxu1 %v581_v13  ;;  %v611_v33 = vld [vmem:[%s838_s1 + $0x10c] ss:$16 sps:$4 sm:$0xff]   ;;  %v613_v34 = vld [vmem:[%s838_s1 + $0x100] ss:$16 sps:$4 sm:$0xff]   ;;  %v614_v35 = vld [vmem:[%s838_s1 + $0x108] ss:$16 sps:$4 sm:$0xff]  }
   0xd   :  { %v18_v36 = vld [vmem:[%s839_s0] sm:$0xff]  ;;  %v617_v38 = vld [vmem:[%s838_s1 + $0x12c] ss:$16 sps:$4 sm:$0xff]   ;;  %v620_v41 = vld [vmem:[%s838_s1 + $0x128] ss:$16 sps:$4 sm:$0xff]  }
   0xe   :  { %v615_v37 = vld [vmem:[%s838_s1 + $0x124] ss:$16 sps:$4 sm:$0xff]   ;;  %v501_v39 = vcombine.high %v18_v36, %v18_v36  ;;  %v619_v40 = vld [vmem:[%s838_s1 + $0x120] ss:$16 sps:$4 sm:$0xff]   ;;  %v623_v43 = vld [vmem:[%s838_s1 + $0x14c] ss:$16 sps:$4 sm:$0xff]   ;;  %v500_v58 = vcombine.low %v18_v36, %v18_v36 }
   0xf   :  { %349 = vmatpush1.bf16.msra.mxu0 %v583_v14  ;;  %390 = vmatpush1.bf16.msra.mxu1 %v584_v15  ;;  %v621_v42 = vld [vmem:[%s838_s1 + $0x144] ss:$16 sps:$4 sm:$0xff]   ;;  %v625_v44 = vld [vmem:[%s838_s1 + $0x140] ss:$16 sps:$4 sm:$0xff]   ;;  %v626_v45 = vld [vmem:[%s838_s1 + $0x148] ss:$16 sps:$4 sm:$0xff]  }
  0x10   :  { %350 = vmatprep.subr.bf16.mxu0 %v585_v16  ;;  %391 = vmatprep.subr.bf16.mxu1 %v587_v17  ;;  %v627_v46 = vld [vmem:[%s838_s1 + $0x164] ss:$16 sps:$4 sm:$0xff]   ;;  %v629_v47 = vld [vmem:[%s838_s1 + $0x16c] ss:$16 sps:$4 sm:$0xff]   ;;  %v631_v50 = vld [vmem:[%s838_s1 + $0x160] ss:$16 sps:$4 sm:$0xff]  }
  0x11   :  { %555 = vmatprep.mubr.msk.bf16.mxu0 %vm325_vm0, %v501_v39  ;;  %557 = vmatprep.mubr.msk.bf16.mxu1 %vm325_vm0, %v501_v39  ;;  %v67_v48 = vld [vmem:[%s838_s1 + $0x180] sm:$0x33]  ;;  %v68_v49 = vld [vmem:[%s838_s1 + $0x188] sm:$0x33] }
  0x12   :  { %v632_v51 = vld [vmem:[%s838_s1 + $0x168] ss:$16 sps:$4 sm:$0xff]   ;;  %v551_v52 = vcombine.high %v67_v48, %v67_v48  ;;  %v553_v53 = vcombine.high %v68_v49, %v68_v49  ;;  %v550_v54 = vcombine.low %v67_v48, %v67_v48  ;;  %v552_v55 = vcombine.low %v68_v49, %v68_v49 }
  0x13   :  { %351 = vmatpush1.bf16.msra.mxu0 %v589_v18  ;;  %392 = vmatpush1.bf16.msra.mxu1 %v590_v19  ;;  %v641_v19 = vmov 0  }
  0x14   :  { %352 = vmatprep.subr.bf16.mxu0 %v591_v20  ;;  %393 = vmatprep.subr.bf16.mxu1 %v593_v21  ;;  %v331_v56 = vsel %vm329_vm1, %v550_v54, 0  ;;  %v337_v57 = vsel %vm329_vm1, %v552_v55, 0 }
  0x15   :  { %559 = vset.pattern.permute.xlu1 %v641_v19  ;;  %560 = vset.pattern.permute.xlu0 %v641_v19 }
  0x17   :  { %353 = vmatpush1.bf16.msra.mxu0 %v595_v22  ;;  %394 = vmatpush1.bf16.msra.mxu1 %v596_v23  ;;  %v424_v23 = vld [vmem:[%s840_s2] sm:$0xff] }
  0x18   :  { %354 = vmatprep.subr.bf16.mxu0 %v597_v24  ;;  %395 = vmatprep.subr.bf16.mxu1 %v599_v25 }
  0x1b   :  { %355 = vmatpush1.bf16.msra.mxu0 %v601_v26  ;;  %396 = vmatpush1.bf16.msra.mxu1 %v602_v27  ;;  %v425_v26 = vld [vmem:[%s841_s3] sm:$0xff] }
  0x1c   :  { %356 = vmatprep.subr.bf16.mxu0 %v603_v28  ;;  %397 = vmatprep.subr.bf16.mxu1 %v605_v29 }
  0x1f   :  { %357 = vmatpush1.bf16.msra.mxu0 %v607_v30  ;;  %398 = vmatpush1.bf16.msra.mxu1 %v608_v31 }
  0x20   :  { %358 = vmatprep.subr.bf16.mxu0 %v609_v32  ;;  %399 = vmatprep.subr.bf16.mxu1 %v611_v33 }
  0x23   :  { %359 = vmatpush1.bf16.msra.mxu0 %v613_v34  ;;  %400 = vmatpush1.bf16.msra.mxu1 %v614_v35 }
  0x24   :  { %360 = vmatprep.subr.bf16.mxu0 %v615_v37  ;;  %401 = vmatprep.subr.bf16.mxu1 %v617_v38 }
  0x27   :  { %361 = vmatpush1.bf16.msra.mxu0 %v619_v40  ;;  %402 = vmatpush1.bf16.msra.mxu1 %v620_v41 }
  0x28   :  { %362 = vmatprep.subr.bf16.mxu0 %v621_v42  ;;  %403 = vmatprep.subr.bf16.mxu1 %v623_v43 }
  0x2b   :  { %363 = vmatpush1.bf16.msra.mxu0 %v625_v44  ;;  %404 = vmatpush1.bf16.msra.mxu1 %v626_v45 }
  0x2c   :  { %364 = vmatprep.subr.bf16.mxu0 %v627_v46  ;;  %405 = vmatprep.subr.bf16.mxu1 %v629_v47 }
  0x2f   :  { %365 = vmatpush1.bf16.msra.mxu0 %v631_v50  ;;  %406 = vmatpush1.bf16.msra.mxu1 %v632_v51 }
  0x30   :  { %554 = vmatprep.subr.msk.bf16.mxu0 %vm329_vm1, %v551_v52  ;;  %556 = vmatprep.subr.msk.bf16.mxu1 %vm329_vm1, %v553_v53 }
  0x33   :  { %367 = vmatpush1.bf16.msra.mxu0 %v331_v56  ;;  %408 = vmatpush1.bf16.msra.mxu1 %v337_v57 }
  0x36   :  { %375 = vmatmul.mubr.bf16.vlgmr.msra.gmra.mrb[0].mxu0 %v500_v58  ;;  %416 = vmatmul.mubr.bf16.vlgmr.msra.gmra.mrb[0].mxu1 %v500_v58 }
 0x109   :  { %v376_v59 = vpop.f32.mrb[0].mxu0  ;;  %v417_v60 = vpop.f32.mrb[0].mxu1 }
 0x10a   :  { %v378_v61 = vpop.f32.mrb[1].mxu0  ;;  %v419_v62 = vpop.f32.mrb[1].mxu1 }
 0x10b   :  { %v426_v63 = vadd.f32 %v378_v61, %v376_v59  ;;  %v380_v0 = vpop.f32.mrb[2].mxu0  ;;  %v421_v1 = vpop.f32.mrb[2].mxu1 }
 0x10c   :  { %v381_v2 = vpop.f32.mrb[3].mxu0  ;;  %v422_v3 = vpop.f32.mrb[3].mxu1 }
 0x10d   :  { %v427_v4 = vadd.f32 %v426_v63, %v417_v60 }
 0x10f   :  { %v428_v5 = vadd.f32 %v427_v4, %v419_v62 }
 0x111   :  { %429 = vadd.xlane.f32.xlu0 %v428_v5 }
 0x19e   :  { %v430_v6 = vpop.xlane.xlu0 %429 }
 0x19f   :  { %v431_v7 = vmul.f32 0.001953125, %v430_v6 }
 0x1a1   :  { %v441_v8 = vsub.f32 %v376_v59, %v431_v7  ;;  %v442_v9 = vsub.f32 %v378_v61, %v431_v7  ;;  %v443_v10 = vsub.f32 %v417_v60, %v431_v7  ;;  %v444_v11 = vsub.f32 %v419_v62, %v431_v7 }
 0x1a3   :  { %v449_v12 = vmul.f32 %v441_v8, %v441_v8  ;;  %v450_v13 = vmul.f32 %v442_v9, %v442_v9  ;;  %v451_v14 = vmul.f32 %v443_v10, %v443_v10  ;;  %v452_v16 = vmul.f32 %v444_v11, %v444_v11 }
 0x1a5   :  { %v453_v15 = vadd.f32 %v450_v13, %v449_v12 }
 0x1a7   :  { %v454_v17 = vadd.f32 %v453_v15, %v451_v14 }
 0x1a9   :  { %v455_v18 = vadd.f32 %v454_v17, %v452_v16 }
 0x1ab   :  { %456 = vadd.xlane.f32.xlu0 %v455_v18 }
 0x238   :  { %v457_v20 = vpop.xlane.xlu0 %456 }
 0x239   :  { %v458_v21 = vmul.f32 0.001953125, %v457_v20 }
 0x23b   :  { %v459_v22 = vadd.f32 1e-05, %v458_v21 }
 0x23d   :  { %639 = vrsqrt.f32 %v459_v22 }
 0x247   :  { %v640_v24 = vpop.eup %639 }
 0x248   :  { %v461_v25 = vmul.f32 %v640_v24, %v424_v23 }
 0x24a   :  { %464 = vperm.xlu1 %559, %v461_v25  }
 0x24e   :  { %473 = vperm.xlu1 %559, %v425_v26  }
 0x2c9   :  { %v465_v27 = vpop.permute.xlu1 %464 }
 0x2ca   :  { %v467_v28 = vmul.f32 %v465_v27, %v441_v8  ;;  %v468_v29 = vmul.f32 %v465_v27, %v442_v9  ;;  %v469_v30 = vmul.f32 %v465_v27, %v443_v10  ;;  %v470_v31 = vmul.f32 %v465_v27, %v444_v11 }
 0x2cd   :  { %v474_v32 = vpop.permute.xlu1 %473 }
 0x2ce   :  { %v476_v33 = vadd.f32 %v474_v32, %v467_v28  ;;  %v477_v34 = vadd.f32 %v474_v32, %v468_v29  ;;  %v478_v35 = vadd.f32 %v474_v32, %v469_v30  ;;  %v479_v36 = vadd.f32 %v474_v32, %v470_v31 }
 0x2d0   :  { %vm480_vm2 = vcmp.ge.f32.partialorder %v476_v33, 0.0  ;;  %vm481_vm3 = vcmp.ge.f32.partialorder %v477_v34, 0.0  ;;  %vm482_vm4 = vcmp.ge.f32.partialorder %v478_v35, 0.0  ;;  %vm483_vm5 = vcmp.ge.f32.partialorder %v479_v36, 0.0 }
 0x2d1   :  { %v484_v37 = vmul.f32 0.2, %v476_v33  ;;  %v485_v38 = vmul.f32 0.2, %v477_v34  ;;  %v486_v39 = vmul.f32 0.2, %v478_v35 }
 0x2d2   :  { %v487_v40 = vmul.f32 0.2, %v479_v36 }
 0x2d3   :  { %v488_v41 = vsel %vm480_vm2, %v476_v33, %v484_v37  ;;  %v489_v42 = vsel %vm481_vm3, %v477_v34, %v485_v38  ;;  %v490_v43 = vsel %vm482_vm4, %v478_v35, %v486_v39 }
 0x2d4   :  { %v491_v44 = vsel %vm483_vm5, %v479_v36, %v487_v40  ;;  %492 = vst [vmem:[%s842_s4] sm:$0xff] %v488_v41  ;;  %493 = vst [vmem:[%s842_s4 + $0x8] sm:$0xff] %v489_v42 }
 0x2d5   :  { %494 = vst [vmem:[%s842_s4 + $0x10] sm:$0xff] %v490_v43  ;;  %495 = vst [vmem:[%s842_s4 + $0x18] sm:$0xff] %v491_v44 }

// kernel: resnet_discriminator_forward.8
= control target key start
LH: loop header
LB: loop body
LE: loop exit
PB: predicated region body
PF: predicated region fallthrough
CT: control target
= control target key end

     0   :  { %v219_v0 = vmov 0.0   ;;  %vm220_vm0 = vmmov 0   ;;  %vm65_vm1 = vcmask 1043456   ;;  %vm61_vm2 = vcmask 588800   ;;  %s283_s1 = inlined_call_operand.vmem [shape: bf16[72,128], index: 1, kind: input, shape index: {}]   ;;  %s284_s0 = inlined_call_operand.vmem [shape: bf16[16,72], index: 0, kind: input, shape index: {}]   ;;  %s285_s3 = inlined_call_operand.vmem [shape: f32[16,1], index: 3, kind: input, shape index: {}]   ;;  %s286_s2 = inlined_call_operand.vmem [shape: f32[16,1], index: 2, kind: input, shape index: {}]   ;;  %s287_s4 = inlined_call_operand.vmem [shape: f32[16,128], index: 4, kind: output, shape index: {}]  }
   0x1   :  { %190 = vmatprep.subr.bf16.mxu0 %v219_v0  ;;  %v209_v1 = vld [vmem:[%s283_s1] sm:$0xff]   ;;  %200 = vmatprep.mubr.msk.bf16.mxu0 %vm220_vm0, %v219_v0  ;;  %v210_v2 = vld [vmem:[%s283_s1 + $0x8] sm:$0xff]   ;;  %v211_v3 = vld [vmem:[%s283_s1 + $0x10] sm:$0xff]   ;;  %v221_v20 = vmov 0  }
   0x2   :  { %191 = vmatpush3.bf16.msra.mxu0 %v209_v1  ;;  %v212_v4 = vld [vmem:[%s283_s1 + $0x18] sm:$0xff]   ;;  %v213_v5 = vld [vmem:[%s283_s1 + $0x20] ss:$0 sps:$4 sm:$0xff]   ;;  %208 = vset.pattern.permute.xlu1 %v221_v20  ;;  %v111_v31 = vld [vmem:[%s286_s2 + $0x8] sm:$0xff] }
   0x3   :  { %192 = vmatprep.subr.bf16.mxu0 %v219_v0  ;;  %v67_v6 = vsel %vm65_vm1, %v213_v5, 0  ;;  %v214_v7 = vld [vmem:[%s284_s0] sm:$0xff]   ;;  %207 = vset.pattern.permute.xlu0 %v221_v20  ;;  %v113_v34 = vld [vmem:[%s285_s3 + $0x8] sm:$0xff] }
   0x4   :  { %v112_v21 = vld [vmem:[%s285_s3] sm:$0xff] }
   0x5   :  { %v110_v28 = vld [vmem:[%s286_s2] sm:$0xff] }
   0x6   :  { %193 = vmatpush3.bf16.msra.mxu0 %v210_v2 }
   0x7   :  { %194 = vmatprep.subr.bf16.mxu0 %v219_v0 }
   0xa   :  { %195 = vmatpush3.bf16.msra.mxu0 %v211_v3 }
   0xb   :  { %196 = vmatprep.subr.bf16.mxu0 %v219_v0 }
   0xe   :  { %197 = vmatpush3.bf16.msra.mxu0 %v212_v4 }
   0xf   :  { %198 = vmatprep.subr.bf16.mxu0 %v219_v0 }
  0x12   :  { %199 = vmatpush3.bf16.msra.mxu0 %v67_v6 }
  0x15   :  { %201 = vmatmul.mubr.msk.bf16.vlgmr.msra.gmra.mrb[0].mxu0 %vm61_vm2, %v214_v7 }
  0xe8   :  { %v103_v8 = vpop.f32.mrb[0].mxu0 }
  0xe9   :  { %114 = vadd.xlane.f32.xlu0 %v103_v8  ;;  %v202_v9 = vpop.f32.mrb[1].mxu0 }
  0xea   :  { %v106_v10 = vpop.f32.mrb[2].mxu0 }
  0xeb   :  { %v203_v11 = vpop.f32.mrb[3].mxu0 }
  0xed   :  { %116 = vadd.xlane.f32.xlu0 %v106_v10 }
 0x176   :  { %v115_v12 = vpop.xlane.xlu0 %114 }
 0x177   :  { %v118_v13 = vmul.f32 0.0078125, %v115_v12 }
 0x179   :  { %v123_v14 = vsub.f32 %v103_v8, %v118_v13 }
 0x17a   :  { %v117_v15 = vpop.xlane.xlu0 %116 }
 0x17b   :  { %v119_v16 = vmul.f32 0.0078125, %v117_v15  ;;  %v127_v17 = vmul.f32 %v123_v14, %v123_v14 }
 0x17d   :  { %v124_v18 = vsub.f32 %v106_v10, %v119_v16  ;;  %129 = vadd.xlane.f32.xlu1 %v127_v17 }
 0x17f   :  { %v128_v19 = vmul.f32 %v124_v18, %v124_v18 }
 0x181   :  { %131 = vadd.xlane.f32.xlu1 %v128_v19 }
 0x192   :  { %155 = vperm.xlu1 %208, %v112_v21  }
 0x20a   :  { %v130_v22 = vpop.xlane.xlu1 %129 }
 0x20b   :  { %v133_v23 = vmul.f32 0.0078125, %v130_v22 }
 0x20d   :  { %v135_v24 = vadd.f32 1e-05, %v133_v23 }
 0x20e   :  { %v132_v25 = vpop.xlane.xlu1 %131 }
 0x20f   :  { %215 = vrsqrt.f32 %v135_v24  ;;  %v134_v26 = vmul.f32 0.0078125, %v132_v25 }
 0x211   :  { %v136_v27 = vadd.f32 1e-05, %v134_v26 }
 0x212   :  { %v156_v35 = vpop.permute.xlu1 %155 }
 0x213   :  { %217 = vrsqrt.f32 %v136_v27 }
 0x219   :  { %v216_v29 = vpop.eup %215 }
 0x21a   :  { %v139_v30 = vmul.f32 %v216_v29, %v110_v28 }
 0x21c   :  { %143 = vperm.xlu0 %207, %v139_v30  }
 0x21d   :  { %v218_v32 = vpop.eup %217 }
 0x21e   :  { %v140_v33 = vmul.f32 %v218_v32, %v111_v31 }
 0x220   :  { %148 = vperm.xlu1 %208, %v140_v33  }
 0x224   :  { %160 = vperm.xlu1 %208, %v113_v34  }
 0x29b   :  { %v144_v36 = vpop.permute.xlu0 %143 }
 0x29c   :  { %v151_v37 = vmul.f32 %v144_v36, %v123_v14 }
 0x29e   :  { %v163_v38 = vadd.f32 %v156_v35, %v151_v37 }
 0x29f   :  { %v149_v39 = vpop.permute.xlu1 %148 }
 0x2a0   :  { %vm165_vm3 = vcmp.ge.f32.partialorder %v163_v38, 0.0  ;;  %v167_v40 = vmul.f32 0.2, %v163_v38  ;;  %v152_v42 = vmul.f32 %v149_v39, %v124_v18 }
 0x2a2   :  { %v169_v41 = vsel %vm165_vm3, %v163_v38, %v167_v40 }
 0x2a3   :  { %v161_v43 = vpop.permute.xlu1 %160  ;;  %171 = vst [vmem:[%s287_s4] sm:$0xff] %v169_v41 }
 0x2a4   :  { %v164_v44 = vadd.f32 %v161_v43, %v152_v42 }
 0x2a6   :  { %vm166_vm4 = vcmp.ge.f32.partialorder %v164_v44, 0.0  ;;  %v168_v45 = vmul.f32 0.2, %v164_v44 }
 0x2a8   :  { %v170_v46 = vsel %vm166_vm4, %v164_v44, %v168_v45 }
 0x2a9   :  { %172 = vst [vmem:[%s287_s4 + $0x8] sm:$0xff] %v170_v46 }

// kernel: resnet_discriminator_forward.9
= control target key start
LH: loop header
LB: loop body
LE: loop exit
PB: predicated region body
PF: predicated region fallthrough
CT: control target
= control target key end

     0   :  { %v354_v0 = vmov 0   ;;  %vm112_vm0 = vcmask 130048   ;;  %v188_v22 = vlaneseq  ;;  %s475_s1 = inlined_call_operand.vmem [shape: bf16[144,128], index: 1, kind: input, shape index: {}]   ;;  %s476_s0 = inlined_call_operand.vmem [shape: bf16[32,144], index: 0, kind: input, shape index: {}]   ;;  %s477_s3 = inlined_call_operand.vmem [shape: f32[32,1], index: 3, kind: input, shape index: {}]   ;;  %s478_s2 = inlined_call_operand.vmem [shape: f32[32,1], index: 2, kind: input, shape index: {}]   ;;  %s479_s4 = inlined_call_operand.vmem [shape: f32[32,128], index: 4, kind: output, shape index: {}]  }
   0x1   :  { %119 = vmatprep.subr.bf16.mxu0 %v354_v0  ;;  %310 = vmatprep.subr.bf16.mxu1 %v354_v0  ;;  %v331_v1 = vld [vmem:[%s475_s1] sm:$0xff]   ;;  %v332_v2 = vld [vmem:[%s475_s1 + $0x8] sm:$0xff]   ;;  %v333_v3 = vld [vmem:[%s475_s1 + $0x10] sm:$0xff]  }
   0x2   :  { %330 = vset.pattern.permute.xlu1 %v354_v0  ;;  %329 = vset.pattern.permute.xlu0 %v354_v0  ;;  %v334_v4 = vld [vmem:[%s475_s1 + $0x18] sm:$0xff]   ;;  %v342_v5 = vld [vmem:[%s476_s0 + $0x4] ss:$8 sps:$4 sm:$0xff]   ;;  %v337_v9 = vld [vmem:[%s475_s1 + $0x30] sm:$0xff]   ;;  %v189_v23 = vand.u32 127, %v188_v22 }
   0x3   :  { %120 = vmatpush1.bf16.msra.mxu0 %v331_v1  ;;  %319 = vmatpush1.bf16.msra.mxu1 %v331_v1  ;;  %v345_v6 = vld [vmem:[%s476_s0 + $0x14] ss:$8 sps:$4 sm:$0xff]   ;;  %v335_v7 = vld [vmem:[%s475_s1 + $0x20] sm:$0xff]   ;;  %v336_v8 = vld [vmem:[%s475_s1 + $0x28] sm:$0xff]  }
   0x4   :  { %121 = vmatprep.subr.bf16.mxu0 %v354_v0  ;;  %311 = vmatprep.subr.bf16.mxu1 %v354_v0  ;;  %v338_v10 = vld [vmem:[%s475_s1 + $0x38] sm:$0xff]   ;;  %v339_v11 = vld [vmem:[%s475_s1 + $0x40] sm:$0xff]   ;;  %vm190_vm1 = vcmp.lt.s32.totalorder %v189_v23, 32  ;;  %v173_v45 = vld [vmem:[%s477_s3 + $0x8] sm:$0xff] }
   0x5   :  { %308 = vmatprep.mubr.msk.bf16.mxu0 %vm112_vm0, %v342_v5  ;;  %309 = vmatprep.mubr.msk.bf16.mxu1 %vm112_vm0, %v345_v6  ;;  %v340_v12 = vld [vmem:[%s476_s0] ss:$8 sps:$4 sm:$0xff]   ;;  %v343_v13 = vld [vmem:[%s476_s0 + $0x10] ss:$8 sps:$4 sm:$0xff]  }
   0x6   :  { %v172_v44 = vld [vmem:[%s477_s3] sm:$0xff]  ;;  %v174_v46 = vld [vmem:[%s477_s3 + $0x10] sm:$0xff]  ;;  %v171_v5 = vld [vmem:[%s478_s2 + $0x18] sm:$0xff] }
   0x7   :  { %122 = vmatpush1.bf16.msra.mxu0 %v332_v2  ;;  %320 = vmatpush1.bf16.msra.mxu1 %v332_v2  ;;  %v168_v59 = vld [vmem:[%s478_s2] sm:$0xff]  ;;  %v170_v62 = vld [vmem:[%s478_s2 + $0x10] sm:$0xff]  ;;  %v169_v2 = vld [vmem:[%s478_s2 + $0x8] sm:$0xff] }
   0x8   :  { %123 = vmatprep.subr.bf16.mxu0 %v354_v0  ;;  %312 = vmatprep.subr.bf16.mxu1 %v354_v0 }
   0xb   :  { %124 = vmatpush1.bf16.msra.mxu0 %v333_v3  ;;  %321 = vmatpush1.bf16.msra.mxu1 %v333_v3 }
   0xc   :  { %125 = vmatprep.subr.bf16.mxu0 %v354_v0  ;;  %313 = vmatprep.subr.bf16.mxu1 %v354_v0 }
   0xf   :  { %126 = vmatpush1.bf16.msra.mxu0 %v334_v4  ;;  %322 = vmatpush1.bf16.msra.mxu1 %v334_v4 }
  0x10   :  { %127 = vmatprep.subr.bf16.mxu0 %v354_v0  ;;  %314 = vmatprep.subr.bf16.mxu1 %v354_v0 }
  0x13   :  { %128 = vmatpush1.bf16.msra.mxu0 %v335_v7  ;;  %323 = vmatpush1.bf16.msra.mxu1 %v335_v7  ;;  %v175_v7 = vld [vmem:[%s477_s3 + $0x18] sm:$0xff] }
  0x14   :  { %129 = vmatprep.subr.bf16.mxu0 %v354_v0  ;;  %315 = vmatprep.subr.bf16.mxu1 %v354_v0 }
  0x17   :  { %130 = vmatpush1.bf16.msra.mxu0 %v336_v8  ;;  %324 = vmatpush1.bf16.msra.mxu1 %v336_v8 }
  0x18   :  { %131 = vmatprep.subr.bf16.mxu0 %v354_v0  ;;  %316 = vmatprep.subr.bf16.mxu1 %v354_v0 }
  0x1b   :  { %132 = vmatpush1.bf16.msra.mxu0 %v337_v9  ;;  %325 = vmatpush1.bf16.msra.mxu1 %v337_v9 }
  0x1c   :  { %133 = vmatprep.subr.bf16.mxu0 %v354_v0  ;;  %317 = vmatprep.subr.bf16.mxu1 %v354_v0 }
  0x1f   :  { %134 = vmatpush1.bf16.msra.mxu0 %v338_v10  ;;  %326 = vmatpush1.bf16.msra.mxu1 %v338_v10 }
  0x20   :  { %135 = vmatprep.subr.bf16.mxu0 %v354_v0  ;;  %318 = vmatprep.subr.bf16.mxu1 %v354_v0 }
  0x23   :  { %136 = vmatpush1.bf16.msra.mxu0 %v339_v11  ;;  %327 = vmatpush1.bf16.msra.mxu1 %v339_v11 }
  0x26   :  { %152 = vmatmul.mubr.bf16.vlgmr.msra.gmra.mrb[0].mxu0 %v340_v12  ;;  %160 = vmatmul.mubr.bf16.vlgmr.msra.gmra.mrb[0].mxu1 %v343_v13 }
  0xf9   :  { %v153_v14 = vpop.f32.mrb[0].mxu0  ;;  %v161_v15 = vpop.f32.mrb[0].mxu1 }
  0xfa   :  { %180 = vadd.xlane.f32.xlu1 %v161_v15  ;;  %176 = vadd.xlane.f32.xlu0 %v153_v14  ;;  %v155_v16 = vpop.f32.mrb[1].mxu0  ;;  %v163_v17 = vpop.f32.mrb[1].mxu1 }
  0xfb   :  { %v156_v18 = vpop.f32.mrb[2].mxu0  ;;  %v164_v19 = vpop.f32.mrb[2].mxu1 }
  0xfc   :  { %v158_v20 = vpop.f32.mrb[3].mxu0  ;;  %v166_v21 = vpop.f32.mrb[3].mxu1 }
  0xfe   :  { %182 = vadd.xlane.f32.xlu1 %v164_v19  ;;  %178 = vadd.xlane.f32.xlu0 %v156_v18 }
 0x187   :  { %v181_v24 = vpop.xlane.xlu1 %180  ;;  %v177_v25 = vpop.xlane.xlu0 %176 }
 0x188   :  { %v186_v26 = vmul.f32 0.03125, %v181_v24  ;;  %v184_v27 = vmul.f32 0.03125, %v177_v25 }
 0x18a   :  { %v419_v28 = vsub.f32 %v161_v15, %v186_v26  ;;  %v421_v29 = vsub.f32 %v153_v14, %v184_v27 }
 0x18b   :  { %v183_v30 = vpop.xlane.xlu1 %182  ;;  %v179_v31 = vpop.xlane.xlu0 %178 }
 0x18c   :  { %v187_v32 = vmul.f32 0.03125, %v183_v30  ;;  %v185_v33 = vmul.f32 0.03125, %v179_v31  ;;  %v195_v34 = vsel %vm190_vm1, %v421_v29, 0.0  ;;  %v197_v38 = vsel %vm190_vm1, %v419_v28, 0.0 }
 0x18d   :  { %v199_v35 = vmul.f32 %v195_v34, %v195_v34  ;;  %v201_v40 = vmul.f32 %v197_v38, %v197_v38 }
 0x18e   :  { %v425_v36 = vsub.f32 %v164_v19, %v187_v32  ;;  %v427_v37 = vsub.f32 %v156_v18, %v185_v33 }
 0x18f   :  { %203 = vadd.xlane.f32.xlu0 %v199_v35 }
 0x190   :  { %v196_v39 = vsel %vm190_vm1, %v427_v37, 0.0  ;;  %v198_v42 = vsel %vm190_vm1, %v425_v36, 0.0 }
 0x191   :  { %v200_v41 = vmul.f32 %v196_v39, %v196_v39  ;;  %v202_v43 = vmul.f32 %v198_v42, %v198_v42 }
 0x193   :  { %207 = vadd.xlane.f32.xlu0 %v201_v40  ;;  %205 = vadd.xlane.f32.xlu1 %v200_v41 }
 0x197   :  { %209 = vadd.xlane.f32.xlu1 %v202_v43 }
 0x1a8   :  { %253 = vperm.xlu1 %330, %v172_v44  }
 0x1ac   :  { %258 = vperm.xlu1 %330, %v173_v45  }
 0x1b0   :  { %263 = vperm.xlu1 %330, %v174_v46  }
 0x21c   :  { %v204_v47 = vpop.xlane.xlu0 %203 }
 0x21d   :  { %v211_v48 = vmul.f32 0.03125, %v204_v47 }
 0x21f   :  { %v215_v49 = vadd.f32 1e-05, %v211_v48 }
 0x220   :  { %v206_v50 = vpop.xlane.xlu1 %205  ;;  %v208_v51 = vpop.xlane.xlu0 %207 }
 0x221   :  { %346 = vrsqrt.f32 %v215_v49  ;;  %v212_v52 = vmul.f32 0.03125, %v206_v50  ;;  %v213_v53 = vmul.f32 0.03125, %v208_v51 }
 0x223   :  { %v217_v54 = vadd.f32 1e-05, %v213_v53  ;;  %v216_v55 = vadd.f32 1e-05, %v212_v52 }
 0x224   :  { %v210_v56 = vpop.xlane.xlu1 %209 }
 0x225   :  { %v214_v57 = vmul.f32 0.03125, %v210_v56  ;;  %348 = vrsqrt.f32 %v217_v54 }
 0x226   :  { %350 = vrsqrt.f32 %v216_v55 }
 0x227   :  { %v218_v58 = vadd.f32 1e-05, %v214_v57 }
 0x228   :  { %v254_v8 = vpop.permute.xlu1 %253 }
 0x229   :  { %352 = vrsqrt.f32 %v218_v58 }
 0x22b   :  { %v347_v60 = vpop.eup %346 }
 0x22c   :  { %v223_v61 = vmul.f32 %v347_v60, %v168_v59  ;;  %v259_v9 = vpop.permute.xlu1 %258 }
 0x22e   :  { %229 = vperm.xlu0 %329, %v223_v61  }
 0x22f   :  { %v349_v63 = vpop.eup %348 }
 0x230   :  { %v225_v0 = vmul.f32 %v349_v63, %v170_v62  ;;  %v351_v1 = vpop.eup %350  ;;  %v264_v11 = vpop.permute.xlu1 %263 }
 0x231   :  { %v224_v3 = vmul.f32 %v351_v1, %v169_v2 }
 0x232   :  { %239 = vperm.xlu1 %330, %v225_v0  }
 0x233   :  { %v353_v4 = vpop.eup %352 }
 0x234   :  { %v226_v6 = vmul.f32 %v353_v4, %v171_v5 }
 0x236   :  { %234 = vperm.xlu1 %330, %v224_v3  }
 0x23a   :  { %244 = vperm.xlu1 %330, %v226_v6  }
 0x23e   :  { %268 = vperm.xlu1 %330, %v175_v7  }
 0x2ad   :  { %v230_v10 = vpop.permute.xlu0 %229 }
 0x2ae   :  { %v247_v12 = vmul.f32 %v230_v10, %v421_v29 }
 0x2b0   :  { %v271_v13 = vadd.f32 %v254_v8, %v247_v12 }
 0x2b1   :  { %v240_v15 = vpop.permute.xlu1 %239 }
 0x2b2   :  { %vm275_vm2 = vcmp.ge.f32.partialorder %v271_v13, 0.0  ;;  %v279_v14 = vmul.f32 0.2, %v271_v13  ;;  %v249_v16 = vmul.f32 %v240_v15, %v419_v28 }
 0x2b4   :  { %v283_v17 = vsel %vm275_vm2, %v271_v13, %v279_v14  ;;  %v273_v18 = vadd.f32 %v264_v11, %v249_v16 }
 0x2b5   :  { %287 = vst [vmem:[%s479_s4] sm:$0xff] %v283_v17  ;;  %v235_v19 = vpop.permute.xlu1 %234 }
 0x2b6   :  { %vm277_vm3 = vcmp.ge.f32.partialorder %v273_v18, 0.0  ;;  %v281_v20 = vmul.f32 0.2, %v273_v18  ;;  %v248_v21 = vmul.f32 %v235_v19, %v427_v37 }
 0x2b8   :  { %v285_v22 = vsel %vm277_vm3, %v273_v18, %v281_v20  ;;  %v272_v23 = vadd.f32 %v259_v9, %v248_v21 }
 0x2b9   :  { %289 = vst [vmem:[%s479_s4 + $0x10] sm:$0xff] %v285_v22  ;;  %v245_v24 = vpop.permute.xlu1 %244 }
 0x2ba   :  { %vm276_vm4 = vcmp.ge.f32.partialorder %v272_v23, 0.0  ;;  %v280_v25 = vmul.f32 0.2, %v272_v23  ;;  %v250_v27 = vmul.f32 %v245_v24, %v425_v36 }
 0x2bc   :  { %v284_v26 = vsel %vm276_vm4, %v272_v23, %v280_v25 }
 0x2bd   :  { %288 = vst [vmem:[%s479_s4 + $0x8] sm:$0xff] %v284_v26  ;;  %v269_v28 = vpop.permute.xlu1 %268 }
 0x2be   :  { %v274_v29 = vadd.f32 %v269_v28, %v250_v27 }
 0x2c0   :  { %vm278_vm5 = vcmp.ge.f32.partialorder %v274_v29, 0.0  ;;  %v282_v30 = vmul.f32 0.2, %v274_v29 }
 0x2c2   :  { %v286_v31 = vsel %vm278_vm5, %v274_v29, %v282_v30 }
 0x2c3   :  { %290 = vst [vmem:[%s479_s4 + $0x18] sm:$0xff] %v286_v31 }

// kernel: resnet_discriminator_forward.10
= control target key start
LH: loop header
LB: loop body
LE: loop exit
PB: predicated region body
PF: predicated region fallthrough
CT: control target
= control target key end

     0   :  { %vm200_vm0 = vcmask 261120   ;;  %v325_v44 = vlaneseq  ;;  %s681_s1 = inlined_call_operand.vmem [shape: bf16[288,128], index: 1, kind: input, shape index: {}]   ;;  %s682_s0 = inlined_call_operand.vmem [shape: bf16[32,288], index: 0, kind: input, shape index: {}]   ;;  %s683_s3 = inlined_call_operand.vmem [shape: f32[32,1], index: 3, kind: input, shape index: {}]   ;;  %s684_s2 = inlined_call_operand.vmem [shape: f32[32,1], index: 2, kind: input, shape index: {}]   ;;  %s685_s4 = inlined_call_operand.vmem [shape: f32[32,128], index: 4, kind: output, shape index: {}]  }
   0x1   :  { %v493_v0 = vld [vmem:[%s681_s1 + $0x40] sm:$0xff]   ;;  %v495_v2 = vld [vmem:[%s681_s1 + $0x48] sm:$0xff]   ;;  %v497_v4 = vld [vmem:[%s681_s1 + $0x50] sm:$0xff]  }
   0x2   :  { %v494_v1 = vld [vmem:[%s681_s1] sm:$0xff]   ;;  %450 = vmatprep.subr.bf16.mxu0 %v493_v0  ;;  %v496_v3 = vld [vmem:[%s681_s1 + $0x8] sm:$0xff]   ;;  %v498_v5 = vld [vmem:[%s681_s1 + $0x10] sm:$0xff]   ;;  %v326_v45 = vand.u32 127, %v325_v44 }
   0x3   :  { %451 = vmatpush3.bf16.msra.mxu0 %v494_v1  ;;  %v499_v6 = vld [vmem:[%s681_s1 + $0x58] sm:$0xff]   ;;  %v501_v8 = vld [vmem:[%s681_s1 + $0x60] sm:$0xff]   ;;  %v508_v11 = vld [vmem:[%s681_s1 + $0x88] sm:$0xff]  }
   0x4   :  { %452 = vmatprep.subr.bf16.mxu0 %v495_v2  ;;  %v500_v7 = vld [vmem:[%s681_s1 + $0x18] sm:$0xff]   ;;  %v505_v9 = vld [vmem:[%s681_s1 + $0x80] sm:$0xff]   ;;  %v503_v12 = vld [vmem:[%s681_s1 + $0x68] sm:$0xff]   ;;  %vm327_vm1 = vcmp.lt.s32.totalorder %v326_v45, 32  ;;  %v527_v2 = vmov 0  }
   0x5   :  { %v502_v10 = vld [vmem:[%s681_s1 + $0x20] sm:$0xff]   ;;  %482 = vmatprep.subr.bf16.mxu1 %v505_v9  ;;  %v504_v13 = vld [vmem:[%s681_s1 + $0x28] sm:$0xff]   ;;  %v506_v15 = vld [vmem:[%s681_s1 + $0x70] sm:$0xff]   ;;  %492 = vset.pattern.permute.xlu1 %v527_v2 }
   0x6   :  { %483 = vmatpush3.bf16.msra.mxu1 %v505_v9  ;;  %v511_v14 = vld [vmem:[%s682_s0 + $0x8] ss:$12 sps:$4 sm:$0xff]   ;;  %v514_v16 = vld [vmem:[%s682_s0 + $0x4] ss:$12 sps:$4 sm:$0xff]   ;;  %v515_v17 = vld [vmem:[%s682_s0 + $0x20] ss:$12 sps:$4 sm:$0xff]   ;;  %491 = vset.pattern.permute.xlu0 %v527_v2 }
   0x7   :  { %453 = vmatpush3.bf16.msra.mxu0 %v496_v3  ;;  %484 = vmatprep.subr.bf16.mxu1 %v508_v11  ;;  %v507_v18 = vld [vmem:[%s681_s1 + $0x30] sm:$0xff]   ;;  %v509_v19 = vld [vmem:[%s681_s1 + $0x78] sm:$0xff]   ;;  %v512_v21 = vld [vmem:[%s682_s0] ss:$12 sps:$4 sm:$0xff]  }
   0x8   :  { %454 = vmatprep.subr.bf16.mxu0 %v497_v4  ;;  %486 = vmatprep.mubr.msk.bf16.mxu1 %vm200_vm0, %v511_v14  ;;  %v510_v20 = vld [vmem:[%s681_s1 + $0x38] sm:$0xff]   ;;  %v309_v3 = vld [vmem:[%s683_s3] sm:$0xff]  ;;  %v310_v4 = vld [vmem:[%s683_s3 + $0x8] sm:$0xff] }
   0x9   :  { %239 = vmatprep.mubr.bf16.mxu0 %v514_v16  ;;  %v516_v22 = vld [vmem:[%s682_s0 + $0x1c] ss:$12 sps:$4 sm:$0xff]   ;;  %v518_v23 = vld [vmem:[%s682_s0 + $0x18] ss:$12 sps:$4 sm:$0xff]  }
   0xa   :  { %485 = vmatpush3.bf16.msra.mxu1 %v508_v11 }
   0xb   :  { %455 = vmatpush3.bf16.msra.mxu0 %v498_v5  ;;  %v311_v5 = vld [vmem:[%s683_s3 + $0x10] sm:$0xff] }
   0xc   :  { %456 = vmatprep.subr.bf16.mxu0 %v499_v6 }
   0xd   :  { %487 = vmatmul.mubr.msk.bf16.vlgmr.msra.gmra.mrb[0].mxu1 %vm200_vm0, %v515_v17  ;;  %v305_v17 = vld [vmem:[%s684_s2] sm:$0xff] }
   0xf   :  { %457 = vmatpush3.bf16.msra.mxu0 %v500_v7 }
  0x10   :  { %458 = vmatprep.subr.bf16.mxu0 %v501_v8 }
  0x13   :  { %459 = vmatpush3.bf16.msra.mxu0 %v502_v10 }
  0x14   :  { %460 = vmatprep.subr.bf16.mxu0 %v503_v12 }
  0x17   :  { %461 = vmatpush3.bf16.msra.mxu0 %v504_v13 }
  0x18   :  { %462 = vmatprep.subr.bf16.mxu0 %v506_v15 }
  0x1b   :  { %463 = vmatpush3.bf16.msra.mxu0 %v507_v18 }
  0x1c   :  { %464 = vmatprep.subr.bf16.mxu0 %v509_v19 }
  0x1f   :  { %465 = vmatpush3.bf16.msra.mxu0 %v510_v20 }
  0x22   :  { %240 = vmatmul.mubr.bf16.vlgmr.msra.gmra.mrb[0].mxu0 %v512_v21  ;;  %v306_v21 = vld [vmem:[%s684_s2 + $0x8] sm:$0xff] }
  0x23   :  { %247 = vmatprep.mubr.bf16.mxu0 %v516_v22 }
  0x2a   :  { %248 = vmatmul.mubr.bf16.gmra.mrb[4].mxu0 %v518_v23 }
  0xe0   :  { %v488_v24 = vpop.f32.mrb[0].mxu1 }
  0xe1   :  { %v290_v25 = vpop.f32.mrb[1].mxu1 }
  0xe2   :  { %v489_v26 = vpop.f32.mrb[2].mxu1 }
  0xe3   :  { %v293_v27 = vpop.f32.mrb[3].mxu1 }
  0xf5   :  { %v466_v28 = vpop.f32.mrb[0].mxu0 }
  0xf6   :  { %v467_v29 = vpop.f32.mrb[1].mxu0 }
  0xf7   :  { %v468_v30 = vadd.f32 %v467_v29, %v466_v28  ;;  %v469_v31 = vpop.f32.mrb[2].mxu0 }
  0xf8   :  { %v470_v32 = vpop.f32.mrb[3].mxu0 }
  0xf9   :  { %v471_v33 = vadd.f32 %v470_v32, %v469_v31  ;;  %v291_v34 = vadd.f32 %v468_v30, %v290_v25  ;;  %v312_v30 = vld [vmem:[%s683_s3 + $0x18] sm:$0xff] }
  0xfb   :  { %313 = vadd.xlane.f32.xlu0 %v291_v34  ;;  %v294_v35 = vadd.f32 %v471_v33, %v293_v27  ;;  %v308_v27 = vld [vmem:[%s684_s2 + $0x18] sm:$0xff] }
  0xfd   :  { %v472_v36 = vpop.f32.mrb[4].mxu0 }
  0xfe   :  { %v473_v37 = vpop.f32.mrb[5].mxu0 }
  0xff   :  { %v474_v38 = vadd.f32 %v473_v37, %v472_v36  ;;  %v475_v39 = vpop.f32.mrb[6].mxu0  ;;  %315 = vadd.xlane.f32.xlu0 %v294_v35 }
 0x100   :  { %v476_v40 = vpop.f32.mrb[7].mxu0 }
 0x101   :  { %v477_v41 = vadd.f32 %v476_v40, %v475_v39  ;;  %v299_v42 = vadd.f32 %v488_v24, %v474_v38  ;;  %v307_v24 = vld [vmem:[%s684_s2 + $0x10] sm:$0xff] }
 0x103   :  { %317 = vadd.xlane.f32.xlu1 %v299_v42  ;;  %v302_v43 = vadd.f32 %v489_v26, %v477_v41 }
 0x107   :  { %319 = vadd.xlane.f32.xlu1 %v302_v43 }
 0x188   :  { %v314_v46 = vpop.xlane.xlu0 %313 }
 0x189   :  { %v321_v47 = vmul.f32 0.03125, %v314_v46 }
 0x18b   :  { %v625_v48 = vsub.f32 %v291_v34, %v321_v47 }
 0x18c   :  { %v316_v49 = vpop.xlane.xlu0 %315 }
 0x18d   :  { %v322_v50 = vmul.f32 0.03125, %v316_v49  ;;  %v332_v51 = vsel %vm327_vm1, %v625_v48, 0.0 }
 0x18e   :  { %v336_v52 = vmul.f32 %v332_v51, %v332_v51 }
 0x18f   :  { %v629_v53 = vsub.f32 %v294_v35, %v322_v50 }
 0x190   :  { %v318_v54 = vpop.xlane.xlu1 %317  ;;  %340 = vadd.xlane.f32.xlu0 %v336_v52 }
 0x191   :  { %v323_v55 = vmul.f32 0.03125, %v318_v54  ;;  %v333_v56 = vsel %vm327_vm1, %v629_v53, 0.0 }
 0x192   :  { %v337_v57 = vmul.f32 %v333_v56, %v333_v56 }
 0x193   :  { %v633_v58 = vsub.f32 %v299_v42, %v323_v55 }
 0x194   :  { %v320_v59 = vpop.xlane.xlu1 %319  ;;  %342 = vadd.xlane.f32.xlu1 %v337_v57 }
 0x195   :  { %v324_v60 = vmul.f32 0.03125, %v320_v59  ;;  %v334_v61 = vsel %vm327_vm1, %v633_v58, 0.0 }
 0x196   :  { %v338_v62 = vmul.f32 %v334_v61, %v334_v61 }
 0x197   :  { %v637_v63 = vsub.f32 %v302_v43, %v324_v60 }
 0x198   :  { %344 = vadd.xlane.f32.xlu0 %v338_v62 }
 0x199   :  { %v335_v0 = vsel %vm327_vm1, %v637_v63, 0.0 }
 0x19a   :  { %v339_v1 = vmul.f32 %v335_v0, %v335_v0 }
 0x19c   :  { %346 = vadd.xlane.f32.xlu1 %v339_v1 }
 0x1ad   :  { %390 = vperm.xlu1 %492, %v309_v3  }
 0x1b1   :  { %395 = vperm.xlu1 %492, %v310_v4  }
 0x1b5   :  { %400 = vperm.xlu1 %492, %v311_v5  }
 0x21d   :  { %v341_v6 = vpop.xlane.xlu0 %340 }
 0x21e   :  { %v348_v7 = vmul.f32 0.03125, %v341_v6 }
 0x220   :  { %v352_v8 = vadd.f32 1e-05, %v348_v7 }
 0x221   :  { %v343_v9 = vpop.xlane.xlu1 %342 }
 0x222   :  { %519 = vrsqrt.f32 %v352_v8  ;;  %v349_v10 = vmul.f32 0.03125, %v343_v9 }
 0x224   :  { %v353_v11 = vadd.f32 1e-05, %v349_v10 }
 0x225   :  { %v345_v12 = vpop.xlane.xlu0 %344 }
 0x226   :  { %521 = vrsqrt.f32 %v353_v11  ;;  %v350_v13 = vmul.f32 0.03125, %v345_v12 }
 0x228   :  { %v354_v14 = vadd.f32 1e-05, %v350_v13 }
 0x229   :  { %v347_v15 = vpop.xlane.xlu1 %346 }
 0x22a   :  { %523 = vrsqrt.f32 %v354_v14  ;;  %v351_v16 = vmul.f32 0.03125, %v347_v15 }
 0x22c   :  { %v520_v18 = vpop.eup %519  ;;  %v355_v19 = vadd.f32 1e-05, %v351_v16 }
 0x22d   :  { %v360_v20 = vmul.f32 %v520_v18, %v305_v17  ;;  %v391_v31 = vpop.permute.xlu1 %390 }
 0x22e   :  { %525 = vrsqrt.f32 %v355_v19 }
 0x22f   :  { %366 = vperm.xlu0 %491, %v360_v20  }
 0x230   :  { %v522_v22 = vpop.eup %521 }
 0x231   :  { %v361_v23 = vmul.f32 %v522_v22, %v306_v21  ;;  %v396_v32 = vpop.permute.xlu1 %395 }
 0x233   :  { %371 = vperm.xlu1 %492, %v361_v23  }
 0x234   :  { %v524_v25 = vpop.eup %523 }
 0x235   :  { %v362_v26 = vmul.f32 %v524_v25, %v307_v24  ;;  %v401_v33 = vpop.permute.xlu1 %400 }
 0x237   :  { %376 = vperm.xlu1 %492, %v362_v26  }
 0x238   :  { %v526_v28 = vpop.eup %525 }
 0x239   :  { %v363_v29 = vmul.f32 %v526_v28, %v308_v27 }
 0x23b   :  { %381 = vperm.xlu1 %492, %v363_v29  }
 0x23f   :  { %405 = vperm.xlu1 %492, %v312_v30  }
 0x2ae   :  { %v367_v34 = vpop.permute.xlu0 %366 }
 0x2af   :  { %v384_v35 = vmul.f32 %v367_v34, %v625_v48 }
 0x2b1   :  { %v408_v36 = vadd.f32 %v391_v31, %v384_v35 }
 0x2b2   :  { %v372_v37 = vpop.permute.xlu1 %371 }
 0x2b3   :  { %v412_v38 = vmax.f32 %v408_v36, 0.0  ;;  %v385_v39 = vmul.f32 %v372_v37, %v629_v53 }
 0x2b5   :  { %416 = vst [vmem:[%s685_s4] sm:$0xff] %v412_v38  ;;  %v409_v40 = vadd.f32 %v396_v32, %v385_v39 }
 0x2b6   :  { %v377_v41 = vpop.permute.xlu1 %376 }
 0x2b7   :  { %v413_v42 = vmax.f32 %v409_v40, 0.0  ;;  %v386_v43 = vmul.f32 %v377_v41, %v633_v58 }
 0x2b9   :  { %417 = vst [vmem:[%s685_s4 + $0x8] sm:$0xff] %v413_v42  ;;  %v410_v44 = vadd.f32 %v401_v33, %v386_v43 }
 0x2ba   :  { %v382_v45 = vpop.permute.xlu1 %381 }
 0x2bb   :  { %v414_v46 = vmax.f32 %v410_v44, 0.0  ;;  %v387_v47 = vmul.f32 %v382_v45, %v637_v63 }
 0x2bd   :  { %418 = vst [vmem:[%s685_s4 + $0x10] sm:$0xff] %v414_v46 }
 0x2be   :  { %v406_v48 = vpop.permute.xlu1 %405 }
 0x2bf   :  { %v411_v49 = vadd.f32 %v406_v48, %v387_v47 }
 0x2c1   :  { %v415_v50 = vmax.f32 %v411_v49, 0.0 }
 0x2c3   :  { %419 = vst [vmem:[%s685_s4 + $0x18] sm:$0xff] %v415_v50 }

// kernel: resnet_discriminator_forward.11
= control target key start
LH: loop header
LB: loop body
LE: loop exit
PB: predicated region body
PF: predicated region fallthrough
CT: control target
= control target key end

     0   :  { %vm203_vm0 = vcmask 261120   ;;  %v328_v44 = vlaneseq  ;;  %s705_s1 = inlined_call_operand.vmem [shape: bf16[288,128], index: 1, kind: input, shape index: {}]   ;;  %s706_s0 = inlined_call_operand.vmem [shape: bf16[32,288], index: 0, kind: input, shape index: {}]   ;;  %s707_s4 = inlined_call_operand.vmem [shape: f32[32,1], index: 4, kind: input, shape index: {}]   ;;  %s708_s3 = inlined_call_operand.vmem [shape: f32[32,1], index: 3, kind: input, shape index: {}]   ;;  %s709_s2 = inlined_call_operand.vmem [shape: f32[32,128], index: 2, kind: input, shape index: {}]   ;;  %s710_s5 = inlined_call_operand.vmem [shape: f32[32,128], index: 5, kind: output, shape index: {}]  }
   0x1   :  { %v500_v0 = vld [vmem:[%s705_s1 + $0x40] sm:$0xff]   ;;  %v502_v2 = vld [vmem:[%s705_s1 + $0x48] sm:$0xff]   ;;  %v504_v4 = vld [vmem:[%s705_s1 + $0x50] sm:$0xff]  }
   0x2   :  { %v501_v1 = vld [vmem:[%s705_s1] sm:$0xff]   ;;  %457 = vmatprep.subr.bf16.mxu0 %v500_v0  ;;  %v503_v3 = vld [vmem:[%s705_s1 + $0x8] sm:$0xff]   ;;  %v505_v5 = vld [vmem:[%s705_s1 + $0x10] sm:$0xff]   ;;  %v329_v45 = vand.u32 127, %v328_v44 }
   0x3   :  { %458 = vmatpush3.bf16.msra.mxu0 %v501_v1  ;;  %v506_v6 = vld [vmem:[%s705_s1 + $0x58] sm:$0xff]   ;;  %v508_v8 = vld [vmem:[%s705_s1 + $0x60] sm:$0xff]   ;;  %v515_v11 = vld [vmem:[%s705_s1 + $0x88] sm:$0xff]  }
   0x4   :  { %459 = vmatprep.subr.bf16.mxu0 %v502_v2  ;;  %v507_v7 = vld [vmem:[%s705_s1 + $0x18] sm:$0xff]   ;;  %v512_v9 = vld [vmem:[%s705_s1 + $0x80] sm:$0xff]   ;;  %v510_v12 = vld [vmem:[%s705_s1 + $0x68] sm:$0xff]   ;;  %vm330_vm1 = vcmp.lt.s32.totalorder %v329_v45, 32  ;;  %v534_v2 = vmov 0  }
   0x5   :  { %v509_v10 = vld [vmem:[%s705_s1 + $0x20] sm:$0xff]   ;;  %489 = vmatprep.subr.bf16.mxu1 %v512_v9  ;;  %v511_v13 = vld [vmem:[%s705_s1 + $0x28] sm:$0xff]   ;;  %v513_v15 = vld [vmem:[%s705_s1 + $0x70] sm:$0xff]   ;;  %499 = vset.pattern.permute.xlu1 %v534_v2 }
   0x6   :  { %490 = vmatpush3.bf16.msra.mxu1 %v512_v9  ;;  %v518_v14 = vld [vmem:[%s706_s0 + $0x8] ss:$12 sps:$4 sm:$0xff]   ;;  %v521_v16 = vld [vmem:[%s706_s0 + $0x4] ss:$12 sps:$4 sm:$0xff]   ;;  %v522_v17 = vld [vmem:[%s706_s0 + $0x20] ss:$12 sps:$4 sm:$0xff]   ;;  %498 = vset.pattern.permute.xlu0 %v534_v2 }
   0x7   :  { %460 = vmatpush3.bf16.msra.mxu0 %v503_v3  ;;  %491 = vmatprep.subr.bf16.mxu1 %v515_v11  ;;  %v514_v18 = vld [vmem:[%s705_s1 + $0x30] sm:$0xff]   ;;  %v516_v19 = vld [vmem:[%s705_s1 + $0x78] sm:$0xff]   ;;  %v519_v21 = vld [vmem:[%s706_s0] ss:$12 sps:$4 sm:$0xff]  }
   0x8   :  { %461 = vmatprep.subr.bf16.mxu0 %v504_v4  ;;  %493 = vmatprep.mubr.msk.bf16.mxu1 %vm203_vm0, %v518_v14  ;;  %v517_v20 = vld [vmem:[%s705_s1 + $0x38] sm:$0xff]   ;;  %v312_v3 = vld [vmem:[%s707_s4] sm:$0xff]  ;;  %v313_v4 = vld [vmem:[%s707_s4 + $0x8] sm:$0xff] }
   0x9   :  { %242 = vmatprep.mubr.bf16.mxu0 %v521_v16  ;;  %v523_v22 = vld [vmem:[%s706_s0 + $0x1c] ss:$12 sps:$4 sm:$0xff]   ;;  %v525_v23 = vld [vmem:[%s706_s0 + $0x18] ss:$12 sps:$4 sm:$0xff]  }
   0xa   :  { %492 = vmatpush3.bf16.msra.mxu1 %v515_v11 }
   0xb   :  { %462 = vmatpush3.bf16.msra.mxu0 %v505_v5  ;;  %v314_v5 = vld [vmem:[%s707_s4 + $0x10] sm:$0xff] }
   0xc   :  { %463 = vmatprep.subr.bf16.mxu0 %v506_v6 }
   0xd   :  { %494 = vmatmul.mubr.msk.bf16.vlgmr.msra.gmra.mrb[0].mxu1 %vm203_vm0, %v522_v17  ;;  %v308_v17 = vld [vmem:[%s708_s3] sm:$0xff] }
   0xf   :  { %464 = vmatpush3.bf16.msra.mxu0 %v507_v7 }
  0x10   :  { %465 = vmatprep.subr.bf16.mxu0 %v508_v8 }
  0x13   :  { %466 = vmatpush3.bf16.msra.mxu0 %v509_v10 }
  0x14   :  { %467 = vmatprep.subr.bf16.mxu0 %v510_v12 }
  0x17   :  { %468 = vmatpush3.bf16.msra.mxu0 %v511_v13 }
  0x18   :  { %469 = vmatprep.subr.bf16.mxu0 %v513_v15 }
  0x1b   :  { %470 = vmatpush3.bf16.msra.mxu0 %v514_v18 }
  0x1c   :  { %471 = vmatprep.subr.bf16.mxu0 %v516_v19 }
  0x1f   :  { %472 = vmatpush3.bf16.msra.mxu0 %v517_v20 }
  0x22   :  { %243 = vmatmul.mubr.bf16.vlgmr.msra.gmra.mrb[0].mxu0 %v519_v21  ;;  %v309_v21 = vld [vmem:[%s708_s3 + $0x8] sm:$0xff] }
  0x23   :  { %250 = vmatprep.mubr.bf16.mxu0 %v523_v22 }
  0x2a   :  { %251 = vmatmul.mubr.bf16.gmra.mrb[4].mxu0 %v525_v23 }
  0xe0   :  { %v495_v24 = vpop.f32.mrb[0].mxu1 }
  0xe1   :  { %v293_v25 = vpop.f32.mrb[1].mxu1 }
  0xe2   :  { %v496_v26 = vpop.f32.mrb[2].mxu1 }
  0xe3   :  { %v296_v27 = vpop.f32.mrb[3].mxu1 }
  0xf5   :  { %v473_v28 = vpop.f32.mrb[0].mxu0 }
  0xf6   :  { %v474_v29 = vpop.f32.mrb[1].mxu0 }
  0xf7   :  { %v475_v30 = vadd.f32 %v474_v29, %v473_v28  ;;  %v476_v31 = vpop.f32.mrb[2].mxu0 }
  0xf8   :  { %v477_v32 = vpop.f32.mrb[3].mxu0 }
  0xf9   :  { %v478_v33 = vadd.f32 %v477_v32, %v476_v31  ;;  %v294_v34 = vadd.f32 %v475_v30, %v293_v25  ;;  %v315_v30 = vld [vmem:[%s707_s4 + $0x18] sm:$0xff] }
  0xfb   :  { %316 = vadd.xlane.f32.xlu0 %v294_v34  ;;  %v297_v35 = vadd.f32 %v478_v33, %v296_v27  ;;  %v311_v27 = vld [vmem:[%s708_s3 + $0x18] sm:$0xff] }
  0xfd   :  { %v479_v36 = vpop.f32.mrb[4].mxu0 }
  0xfe   :  { %v480_v37 = vpop.f32.mrb[5].mxu0 }
  0xff   :  { %v481_v38 = vadd.f32 %v480_v37, %v479_v36  ;;  %v482_v39 = vpop.f32.mrb[6].mxu0  ;;  %318 = vadd.xlane.f32.xlu0 %v297_v35  ;;  %v415_v36 = vld [vmem:[%s709_s2] sm:$0xff] }
 0x100   :  { %v483_v40 = vpop.f32.mrb[7].mxu0 }
 0x101   :  { %v484_v41 = vadd.f32 %v483_v40, %v482_v39  ;;  %v302_v42 = vadd.f32 %v495_v24, %v481_v38  ;;  %v310_v24 = vld [vmem:[%s708_s3 + $0x10] sm:$0xff] }
 0x103   :  { %320 = vadd.xlane.f32.xlu1 %v302_v42  ;;  %v305_v43 = vadd.f32 %v496_v26, %v484_v41  ;;  %v416_v41 = vld [vmem:[%s709_s2 + $0x8] sm:$0xff] }
 0x107   :  { %322 = vadd.xlane.f32.xlu1 %v305_v43 }
 0x188   :  { %v317_v46 = vpop.xlane.xlu0 %316 }
 0x189   :  { %v324_v47 = vmul.f32 0.03125, %v317_v46  ;;  %v417_v46 = vld [vmem:[%s709_s2 + $0x10] sm:$0xff] }
 0x18b   :  { %v637_v48 = vsub.f32 %v294_v34, %v324_v47 }
 0x18c   :  { %v319_v49 = vpop.xlane.xlu0 %318 }
 0x18d   :  { %v325_v50 = vmul.f32 0.03125, %v319_v49  ;;  %v335_v51 = vsel %vm330_vm1, %v637_v48, 0.0 }
 0x18e   :  { %v339_v52 = vmul.f32 %v335_v51, %v335_v51  ;;  %v418_v51 = vld [vmem:[%s709_s2 + $0x18] sm:$0xff] }
 0x18f   :  { %v641_v53 = vsub.f32 %v297_v35, %v325_v50 }
 0x190   :  { %v321_v54 = vpop.xlane.xlu1 %320  ;;  %343 = vadd.xlane.f32.xlu0 %v339_v52 }
 0x191   :  { %v326_v55 = vmul.f32 0.03125, %v321_v54  ;;  %v336_v56 = vsel %vm330_vm1, %v641_v53, 0.0 }
 0x192   :  { %v340_v57 = vmul.f32 %v336_v56, %v336_v56 }
 0x193   :  { %v645_v58 = vsub.f32 %v302_v42, %v326_v55 }
 0x194   :  { %v323_v59 = vpop.xlane.xlu1 %322  ;;  %345 = vadd.xlane.f32.xlu1 %v340_v57 }
 0x195   :  { %v327_v60 = vmul.f32 0.03125, %v323_v59  ;;  %v337_v61 = vsel %vm330_vm1, %v645_v58, 0.0 }
 0x196   :  { %v341_v62 = vmul.f32 %v337_v61, %v337_v61 }
 0x197   :  { %v649_v63 = vsub.f32 %v305_v43, %v327_v60 }
 0x198   :  { %347 = vadd.xlane.f32.xlu0 %v341_v62 }
 0x199   :  { %v338_v0 = vsel %vm330_vm1, %v649_v63, 0.0 }
 0x19a   :  { %v342_v1 = vmul.f32 %v338_v0, %v338_v0 }
 0x19c   :  { %349 = vadd.xlane.f32.xlu1 %v342_v1 }
 0x1ad   :  { %393 = vperm.xlu1 %499, %v312_v3  }
 0x1b1   :  { %398 = vperm.xlu1 %499, %v313_v4  }
 0x1b5   :  { %403 = vperm.xlu1 %499, %v314_v5  }
 0x21d   :  { %v344_v6 = vpop.xlane.xlu0 %343 }
 0x21e   :  { %v351_v7 = vmul.f32 0.03125, %v344_v6 }
 0x220   :  { %v355_v8 = vadd.f32 1e-05, %v351_v7 }
 0x221   :  { %v346_v9 = vpop.xlane.xlu1 %345 }
 0x222   :  { %526 = vrsqrt.f32 %v355_v8  ;;  %v352_v10 = vmul.f32 0.03125, %v346_v9 }
 0x224   :  { %v356_v11 = vadd.f32 1e-05, %v352_v10 }
 0x225   :  { %v348_v12 = vpop.xlane.xlu0 %347 }
 0x226   :  { %528 = vrsqrt.f32 %v356_v11  ;;  %v353_v13 = vmul.f32 0.03125, %v348_v12 }
 0x228   :  { %v357_v14 = vadd.f32 1e-05, %v353_v13 }
 0x229   :  { %v350_v15 = vpop.xlane.xlu1 %349 }
 0x22a   :  { %530 = vrsqrt.f32 %v357_v14  ;;  %v354_v16 = vmul.f32 0.03125, %v350_v15 }
 0x22c   :  { %v527_v18 = vpop.eup %526  ;;  %v358_v19 = vadd.f32 1e-05, %v354_v16 }
 0x22d   :  { %v363_v20 = vmul.f32 %v527_v18, %v308_v17  ;;  %v394_v31 = vpop.permute.xlu1 %393 }
 0x22e   :  { %532 = vrsqrt.f32 %v358_v19 }
 0x22f   :  { %369 = vperm.xlu0 %498, %v363_v20  }
 0x230   :  { %v529_v22 = vpop.eup %528 }
 0x231   :  { %v364_v23 = vmul.f32 %v529_v22, %v309_v21  ;;  %v399_v32 = vpop.permute.xlu1 %398 }
 0x233   :  { %374 = vperm.xlu1 %499, %v364_v23  }
 0x234   :  { %v531_v25 = vpop.eup %530 }
 0x235   :  { %v365_v26 = vmul.f32 %v531_v25, %v310_v24  ;;  %v404_v33 = vpop.permute.xlu1 %403 }
 0x237   :  { %379 = vperm.xlu1 %499, %v365_v26  }
 0x238   :  { %v533_v28 = vpop.eup %532 }
 0x239   :  { %v366_v29 = vmul.f32 %v533_v28, %v311_v27 }
 0x23b   :  { %384 = vperm.xlu1 %499, %v366_v29  }
 0x23f   :  { %408 = vperm.xlu1 %499, %v315_v30  }
 0x2ae   :  { %v370_v34 = vpop.permute.xlu0 %369 }
 0x2af   :  { %v387_v35 = vmul.f32 %v370_v34, %v637_v48 }
 0x2b1   :  { %v411_v37 = vadd.f32 %v394_v31, %v387_v35 }
 0x2b2   :  { %v375_v38 = vpop.permute.xlu1 %374 }
 0x2b3   :  { %v419_v39 = vadd.f32 %v415_v36, %v411_v37  ;;  %v388_v40 = vmul.f32 %v375_v38, %v641_v53 }
 0x2b5   :  { %423 = vst [vmem:[%s710_s5] sm:$0xff] %v419_v39  ;;  %v412_v42 = vadd.f32 %v399_v32, %v388_v40 }
 0x2b6   :  { %v380_v43 = vpop.permute.xlu1 %379 }
 0x2b7   :  { %v420_v44 = vadd.f32 %v416_v41, %v412_v42  ;;  %v389_v45 = vmul.f32 %v380_v43, %v645_v58 }
 0x2b9   :  { %424 = vst [vmem:[%s710_s5 + $0x8] sm:$0xff] %v420_v44  ;;  %v413_v47 = vadd.f32 %v404_v33, %v389_v45 }
 0x2ba   :  { %v385_v48 = vpop.permute.xlu1 %384 }
 0x2bb   :  { %v421_v49 = vadd.f32 %v417_v46, %v413_v47  ;;  %v390_v50 = vmul.f32 %v385_v48, %v649_v63 }
 0x2bd   :  { %425 = vst [vmem:[%s710_s5 + $0x10] sm:$0xff] %v421_v49 }
 0x2be   :  { %v409_v52 = vpop.permute.xlu1 %408 }
 0x2bf   :  { %v414_v53 = vadd.f32 %v409_v52, %v390_v50 }
 0x2c1   :  { %v422_v54 = vadd.f32 %v418_v51, %v414_v53 }
 0x2c3   :  { %426 = vst [vmem:[%s710_s5 + $0x18] sm:$0xff] %v422_v54 }

</bundles_post_ra>
